<compile_context>
chip_gen: v5e
topology: v5e:2x2
jax: 0.10.0
libtpu: 0.0.40
codegen_flags: <defaults>
</compile_context>

<pallas_src>
import numpy as np
import jax
import jax.numpy as jnp
from jax import lax
from jax.experimental import pallas as pl
from jax.experimental.pallas import tpu as pltpu


# ------------------------------ Pallas kernel --------------------------------

def _rowconv_relu_kernel(x_ref, w_ref, b_ref, o_ref):
    """Fused (transposed-)conv as row-tap matmuls + bias + ReLU for one batch
    element and one output row-phase.

    x_ref: (1, Hp, Wc)       H-padded input, W and C flattened (lane-dense)
    w_ref: (1, T, Wc, WoC)   banded weights for this phase (T row taps)
    b_ref: (1, WoC)          bias, already tiled over output columns
    o_ref: (1, Ho, WoC)      output rows of this phase (dense, lane-aligned)
    """
    n_taps = w_ref.shape[1]
    ho = o_ref.shape[1]
    woc = o_ref.shape[2]
    acc = jnp.zeros((ho, woc), jnp.float32)
    for t in range(n_taps):
        acc = acc + jnp.dot(x_ref[0, t:t + ho, :], w_ref[0, t, :, :],
                            preferred_element_type=jnp.float32)
    acc = acc + b_ref[...]
    o_ref[0] = jnp.maximum(acc, 0.0).astype(o_ref.dtype)


def rowconv_relu(x_flat, w_band, b_row, *, n_out_rows):
    """x_flat: (B, Hp, Wc); w_band: (P, T, Wc, WoC); b_row: (1, WoC).

    Returns (B, n_out_rows, P*WoC) where phase p of logical output row q lives
    at out[b, q, p*WoC:(p+1)*WoC]  ==  NHWC output row (q*P + p)."""
    B, Hp, Wc = x_flat.shape
    P, T, _, WoC = w_band.shape
    if P > 1 and WoC % 128 != 0:
        raise ValueError("phase-interleaved store requires WoC % 128 == 0")
    return pl.pallas_call(
        _rowconv_relu_kernel,
        out_shape=jax.ShapeDtypeStruct((B, n_out_rows, P * WoC), jnp.float32),
        grid_spec=pltpu.PrefetchScalarGridSpec(
            num_scalar_prefetch=0,
            grid=(B, P),
            in_specs=[
                pl.BlockSpec((1, Hp, Wc), lambda b, p: (b, 0, 0)),
                pl.BlockSpec((1, T, Wc, WoC), lambda b, p: (p, 0, 0, 0)),
                pl.BlockSpec((1, WoC), lambda b, p: (0, 0)),
            ],
            out_specs=pl.BlockSpec((1, n_out_rows, WoC),
                                   lambda b, p: (b, 0, p)),
        ),
        compiler_params=pltpu.CompilerParams(
            dimension_semantics=("parallel", "parallel")),
    )(x_flat, w_band, b_row)


# --------------------------- stage wrappers (JAX) -----------------------------

def _apply_stage(x_nhwc, w_band, b_row, n_phases):
    """Run one transposed-conv + ReLU stage.  Output spatial = n_phases * input."""
    B, H, W, C = x_nhwc.shape
    xp = jnp.pad(x_nhwc, ((0, 0), (1, 1), (0, 0), (0, 0)))     # pad rows only
    x_flat = xp.reshape(B, H + 2, W * C)                       # free view
    out = rowconv_relu(x_flat, w_band, b_row, n_out_rows=H)
    WoC = w_band.shape[-1]
    Wo = n_phases * W
    Cout = WoC // Wo
    return out.reshape(B, n_phases * H, Wo, Cout)              # free view


def hyper_dec_forward(x_nhwc, P):
    """x_nhwc: (B, H, W, N2) -> (B, 4H, 4W, 2M), NHWC."""
    y = _apply_stage(x_nhwc, P["w1"], P["b1"], n_phases=2)
    y = _apply_stage(y, P["w2"], P["b2"], n_phases=2)
    y = _apply_stage(y, P["w3"], P["b3"], n_phases=1)
    return y


# --------------------- banded-weight construction (host) ---------------------

def _up_band_weights(wt, bias, w_in):
    """ConvTranspose2d(k=5, stride=2, padding=2, output_padding=1) ->
    banded row-tap weights.

    wt: (Cin, Cout, 5, 5) PyTorch layout; bias: (Cout,).
    Returns band (2, 3, W*Cin, 2W*Cout), b_row (1, 2W*Cout).
    Phase ph handles output rows 2q+ph; row tap t reads padded input row q+t.
    """
    wt = np.asarray(wt, np.float32)
    b = np.asarray(bias, np.float32)
    cin, cout, K, _ = wt.shape                       # K == 5
    wo = 2 * w_in
    # W-direction connectivity: ow = 2*iw - 2 + kw  <=>  iw = (ow + 2 - kw)/2
    sel = np.zeros((K, w_in, wo), np.float32)
    for ow in range(wo):
        for kw in range(K):
            t = ow + 2 - kw
            if t % 2 == 0 and 0 <= t // 2 < w_in:
                sel[kw, t // 2, ow] = 1.0
    # H-direction: [phase][row tap] -> kh (None => zero tap)
    kh_of_tap = [[4, 2, 0], [None, 3, 1]]
    band = np.zeros((2, 3, w_in * cin, wo * cout), np.float32)
    for ph in range(2):
        for t in range(3):
            kh = kh_of_tap[ph][t]
            if kh is None:
                continue
            m = np.einsum("kwo,ick->wioc", sel, wt[:, :, kh, :])
            band[ph, t] = m.reshape(w_in * cin, wo * cout)
    b_row = np.tile(b, wo)[None, :]
    return jnp.asarray(band), jnp.asarray(b_row)


def _same_band_weights(wt, bias, w_in):
    """ConvTranspose2d(k=3, stride=1, padding=1): single phase, 3 row taps."""
    wt = np.asarray(wt, np.float32)
    b = np.asarray(bias, np.float32)
    cin, cout, K, _ = wt.shape                       # K == 3
    wo = w_in
    # ow = iw - 1 + kw  <=>  iw = ow + 1 - kw
    sel = np.zeros((K, w_in, wo), np.float32)
    for ow in range(wo):
        for kw in range(K):
            iw = ow + 1 - kw
            if 0 <= iw < w_in:
                sel[kw, iw, ow] = 1.0
    kh_of_tap = [2, 1, 0]
    band = np.zeros((1, 3, w_in * cin, wo * cout), np.float32)
    for t in range(3):
        m = np.einsum("kwo,ick->wioc", sel, wt[:, :, kh_of_tap[t], :])
        band[0, t] = m.reshape(w_in * cin, wo * cout)
    b_row = np.tile(b, wo)[None, :]
    return jnp.asarray(band), jnp.asarray(b_row)


def prepare_params(pt, H, W):
    w1, b1 = _up_band_weights(pt["wt1"], pt["bt1"], W)
    w2, b2 = _up_band_weights(pt["wt2"], pt["bt2"], 2 * W)
    w3, b3 = _same_band_weights(pt["wt3"], pt["bt3"], 4 * W)
    return dict(w1=w1, b1=b1, w2=w2, b2=b2, w3=w3, b3=b3)


def init_torch_params(key, N2, M):
    ks = jax.random.split(key, 6)

    def nrm(k, shape):
        return 0.05 * jax.random.normal(k, shape, jnp.float32)

    return dict(
        wt1=nrm(ks[0], (N2, N2, 5, 5)), bt1=nrm(ks[1], (N2,)),
        wt2=nrm(ks[2], (N2, N2, 5, 5)), bt2=nrm(ks[3], (N2,)),
        wt3=nrm(ks[4], (N2, 2 * M, 3, 3)), bt3=nrm(ks[5], (2 * M,)),
    )


# ---------------------------- pure-JAX reference ------------------------------

def _ref_convT(x, wt, b, stride, pad, outpad):
    k = wt.shape[2]
    w = jnp.transpose(wt[:, :, ::-1, ::-1], (2, 3, 0, 1))      # HWIO, flipped
    lo = k - 1 - pad
    y = lax.conv_general_dilated(
        x, w, window_strides=(1, 1),
        padding=((lo, lo + outpad), (lo, lo + outpad)),
        lhs_dilation=(stride, stride),
        dimension_numbers=("NHWC", "HWIO", "NHWC"))
    return y + b[None, None, None, :]


def ref_forward(x, pt):
    y = jnp.maximum(_ref_convT(x, pt["wt1"], pt["bt1"], 2, 2, 1), 0.0)
    y = jnp.maximum(_ref_convT(y, pt["wt2"], pt["bt2"], 2, 2, 1), 0.0)
    y = jnp.maximum(_ref_convT(y, pt["wt3"], pt["bt3"], 1, 1, 0), 0.0)
    return y


# ---------------------------------- main --------------------------------------

if __name__ == "__main__":
    key = jax.random.PRNGKey(0)
    k_p, k_x = jax.random.split(key)

    # Hyper_Dec(N2=8, M=4); NCHW input (B, N2, H, W)
    B, N2, M, H, W = 2, 8, 4, 8, 8
    PT = init_torch_params(k_p, N2, M)
    P = prepare_params(PT, H, W)

    x_nchw = jax.random.normal(k_x, (B, N2, H, W), jnp.float32)
    x = jnp.transpose(x_nchw, (0, 2, 3, 1))          # -> NHWC for TPU kernels

    fwd = jax.jit(lambda a: hyper_dec_forward(a, P))
    out = fwd(x)
    jax.block_until_ready(out)
    assert out.shape == (B, 4 * H, 4 * W, 2 * M), out.shape

    with jax.default_matmul_precision("float32"):
        ref = ref_forward(x, PT)
    max_err = float(jnp.max(jnp.abs(out - ref)))
    assert jnp.allclose(out, ref, atol=1e-3, rtol=1e-3), max_err

    print("KERNEL_OK")
</pallas_src>

<mosaic_0001>
module attributes {stable_mosaic.version = 11 : i64} {
  func.func @_rowconv_relu_kernel(%arg0: i32, %arg1: i32, %arg2: memref<1x10x64xf32, #tpu.memory_space<vmem>>, %arg3: memref<1x3x64x128xf32, #tpu.memory_space<vmem>>, %arg4: memref<1x128xf32, #tpu.memory_space<vmem>>, %arg5: memref<1x8x128xf32, #tpu.memory_space<vmem>>) attributes {dimension_semantics = [#tpu.dimension_semantics<parallel>, #tpu.dimension_semantics<parallel>], iteration_bounds = array<i64: 2, 2>, scalar_prefetch = 0 : i64, scratch_operands = 0 : i64, tpu.core_type = #tpu.core_type<tc>, window_params = [{transform_indices = @transform_0, window_bounds = array<i64: 1, 10, 64>}, {transform_indices = @transform_1, window_bounds = array<i64: 1, 3, 64, 128>}, {pipeline_mode = #tpu.pipeline_mode<synchronous>, transform_indices = @transform_2, window_bounds = array<i64: 1, 128>}, {transform_indices = @transform_3, window_bounds = array<i64: 1, 8, 128>}]} {
    %cst = arith.constant 0.000000e+00 : f32
    %0 = vector.broadcast %cst : f32 to vector<8x128xf32>
    %c0 = arith.constant 0 : index
    %c0_0 = arith.constant 0 : index
    %c0_1 = arith.constant 0 : index
    %1 = vector.load %arg2[%c0, %c0_0, %c0_1] : memref<1x10x64xf32, #tpu.memory_space<vmem>>, vector<1x8x64xf32>
    %2 = vector.shape_cast %1 : vector<1x8x64xf32> to vector<8x64xf32>
    %c0_2 = arith.constant 0 : index
    %c0_3 = arith.constant 0 : index
    %c0_4 = arith.constant 0 : index
    %c0_5 = arith.constant 0 : index
    %3 = vector.load %arg3[%c0_2, %c0_3, %c0_4, %c0_5] : memref<1x3x64x128xf32, #tpu.memory_space<vmem>>, vector<1x1x64x128xf32>
    %4 = vector.shape_cast %3 : vector<1x1x64x128xf32> to vector<64x128xf32>
    %cst_6 = arith.constant dense<0.000000e+00> : vector<8x128xf32>
    %5 = tpu.matmul %2, %4, %cst_6 {dimension_numbers = #tpu.dot_dimension_numbers<[1], [0], [0], [1], [0, 0, 1, 1], [], []>} : vector<8x64xf32>, vector<64x128xf32>, vector<8x128xf32> -> vector<8x128xf32>
    %6 = arith.addf %0, %5 : vector<8x128xf32>
    %c0_7 = arith.constant 0 : index
    %c1 = arith.constant 1 : index
    %c0_8 = arith.constant 0 : index
    %7 = vector.load %arg2[%c0_7, %c1, %c0_8] : memref<1x10x64xf32, #tpu.memory_space<vmem>>, vector<1x8x64xf32>
    %8 = vector.shape_cast %7 : vector<1x8x64xf32> to vector<8x64xf32>
    %c0_9 = arith.constant 0 : index
    %c1_10 = arith.constant 1 : index
    %c0_11 = arith.constant 0 : index
    %c0_12 = arith.constant 0 : index
    %9 = vector.load %arg3[%c0_9, %c1_10, %c0_11, %c0_12] : memref<1x3x64x128xf32, #tpu.memory_space<vmem>>, vector<1x1x64x128xf32>
    %10 = vector.shape_cast %9 : vector<1x1x64x128xf32> to vector<64x128xf32>
    %cst_13 = arith.constant dense<0.000000e+00> : vector<8x128xf32>
    %11 = tpu.matmul %8, %10, %cst_13 {dimension_numbers = #tpu.dot_dimension_numbers<[1], [0], [0], [1], [0, 0, 1, 1], [], []>} : vector<8x64xf32>, vector<64x128xf32>, vector<8x128xf32> -> vector<8x128xf32>
    %12 = arith.addf %6, %11 : vector<8x128xf32>
    %c0_14 = arith.constant 0 : index
    %c2 = arith.constant 2 : index
    %c0_15 = arith.constant 0 : index
    %13 = vector.load %arg2[%c0_14, %c2, %c0_15] : memref<1x10x64xf32, #tpu.memory_space<vmem>>, vector<1x8x64xf32>
    %14 = vector.shape_cast %13 : vector<1x8x64xf32> to vector<8x64xf32>
    %c0_16 = arith.constant 0 : index
    %c2_17 = arith.constant 2 : index
    %c0_18 = arith.constant 0 : index
    %c0_19 = arith.constant 0 : index
    %15 = vector.load %arg3[%c0_16, %c2_17, %c0_18, %c0_19] : memref<1x3x64x128xf32, #tpu.memory_space<vmem>>, vector<1x1x64x128xf32>
    %16 = vector.shape_cast %15 : vector<1x1x64x128xf32> to vector<64x128xf32>
    %cst_20 = arith.constant dense<0.000000e+00> : vector<8x128xf32>
    %17 = tpu.matmul %14, %16, %cst_20 {dimension_numbers = #tpu.dot_dimension_numbers<[1], [0], [0], [1], [0, 0, 1, 1], [], []>} : vector<8x64xf32>, vector<64x128xf32>, vector<8x128xf32> -> vector<8x128xf32>
    %18 = arith.addf %12, %17 : vector<8x128xf32>
    %c0_21 = arith.constant 0 : index
    %c0_22 = arith.constant 0 : index
    %19 = vector.load %arg4[%c0_21, %c0_22] : memref<1x128xf32, #tpu.memory_space<vmem>>, vector<1x128xf32>
    %20 = vector.broadcast %19 : vector<1x128xf32> to vector<8x128xf32>
    %21 = arith.addf %18, %20 : vector<8x128xf32>
    %cst_23 = arith.constant 0.000000e+00 : f32
    %22 = vector.broadcast %cst_23 : f32 to vector<8x128xf32>
    %23 = arith.maximumf %21, %22 : vector<8x128xf32>
    %c0_24 = arith.constant 0 : index
    %c0_25 = arith.constant 0 : index
    %c0_26 = arith.constant 0 : index
    %24 = vector.load %arg5[%c0_24, %c0_25, %c0_26] : memref<1x8x128xf32, #tpu.memory_space<vmem>>, vector<1x8x128xf32>
    %25 = vector.shape_cast %24 : vector<1x8x128xf32> to vector<8x128xf32>
    %26 = vector.shape_cast %23 : vector<8x128xf32> to vector<1x8x128xf32>
    tpu.vector_store %arg5[%c0_24, %c0_25, %c0_26], %26 {strides = array<i32>} : memref<1x8x128xf32, #tpu.memory_space<vmem>>, vector<1x8x128xf32>,
    return
  }
  func.func @transform_0(%arg0: i32, %arg1: i32) -> (i32, i32, i32) {
    %c0_i32 = arith.constant 0 : i32
    %c0_i32_0 = arith.constant 0 : i32
    %c0_i32_1 = arith.constant 0 : i32
    return %arg0, %c0_i32, %c0_i32_0 : i32, i32, i32
  }
  func.func @transform_1(%arg0: i32, %arg1: i32) -> (i32, i32, i32, i32) {
    %c0_i32 = arith.constant 0 : i32
    %c0_i32_0 = arith.constant 0 : i32
    %c0_i32_1 = arith.constant 0 : i32
    %c0_i32_2 = arith.constant 0 : i32
    return %arg1, %c0_i32, %c0_i32_0, %c0_i32_1 : i32, i32, i32, i32
  }
  func.func @transform_2(%arg0: i32, %arg1: i32) -> (i32, i32) {
    %c0_i32 = arith.constant 0 : i32
    %c0_i32_0 = arith.constant 0 : i32
    %c0_i32_1 = arith.constant 0 : i32
    return %c0_i32, %c0_i32_0 : i32, i32
  }
  func.func @transform_3(%arg0: i32, %arg1: i32) -> (i32, i32, i32) {
    %c0_i32 = arith.constant 0 : i32
    %c0_i32_0 = arith.constant 0 : i32
    return %arg0, %c0_i32, %arg1 : i32, i32, i32
  }
}

module attributes {stable_mosaic.version = 11 : i64} {
  func.func @_rowconv_relu_kernel(%arg0: i32, %arg1: i32, %arg2: memref<1x18x128xf32, #tpu.memory_space<vmem>>, %arg3: memref<1x3x128x256xf32, #tpu.memory_space<vmem>>, %arg4: memref<1x256xf32, #tpu.memory_space<vmem>>, %arg5: memref<1x16x256xf32, #tpu.memory_space<vmem>>) attributes {dimension_semantics = [#tpu.dimension_semantics<parallel>, #tpu.dimension_semantics<parallel>], iteration_bounds = array<i64: 2, 2>, scalar_prefetch = 0 : i64, scratch_operands = 0 : i64, tpu.core_type = #tpu.core_type<tc>, window_params = [{transform_indices = @transform_0, window_bounds = array<i64: 1, 18, 128>}, {transform_indices = @transform_1, window_bounds = array<i64: 1, 3, 128, 256>}, {pipeline_mode = #tpu.pipeline_mode<synchronous>, transform_indices = @transform_2, window_bounds = array<i64: 1, 256>}, {transform_indices = @transform_3, window_bounds = array<i64: 1, 16, 256>}]} {
    %cst = arith.constant 0.000000e+00 : f32
    %0 = vector.broadcast %cst : f32 to vector<16x256xf32>
    %c0 = arith.constant 0 : index
    %c0_0 = arith.constant 0 : index
    %c0_1 = arith.constant 0 : index
    %1 = vector.load %arg2[%c0, %c0_0, %c0_1] : memref<1x18x128xf32, #tpu.memory_space<vmem>>, vector<1x16x128xf32>
    %2 = vector.shape_cast %1 : vector<1x16x128xf32> to vector<16x128xf32>
    %c0_2 = arith.constant 0 : index
    %c0_3 = arith.constant 0 : index
    %c0_4 = arith.constant 0 : index
    %c0_5 = arith.constant 0 : index
    %3 = vector.load %arg3[%c0_2, %c0_3, %c0_4, %c0_5] : memref<1x3x128x256xf32, #tpu.memory_space<vmem>>, vector<1x1x128x256xf32>
    %4 = vector.shape_cast %3 : vector<1x1x128x256xf32> to vector<128x256xf32>
    %cst_6 = arith.constant dense<0.000000e+00> : vector<16x256xf32>
    %5 = tpu.matmul %2, %4, %cst_6 {dimension_numbers = #tpu.dot_dimension_numbers<[1], [0], [0], [1], [0, 0, 1, 1], [], []>} : vector<16x128xf32>, vector<128x256xf32>, vector<16x256xf32> -> vector<16x256xf32>
    %6 = arith.addf %0, %5 : vector<16x256xf32>
    %c0_7 = arith.constant 0 : index
    %c1 = arith.constant 1 : index
    %c0_8 = arith.constant 0 : index
    %7 = vector.load %arg2[%c0_7, %c1, %c0_8] : memref<1x18x128xf32, #tpu.memory_space<vmem>>, vector<1x16x128xf32>
    %8 = vector.shape_cast %7 : vector<1x16x128xf32> to vector<16x128xf32>
    %c0_9 = arith.constant 0 : index
    %c1_10 = arith.constant 1 : index
    %c0_11 = arith.constant 0 : index
    %c0_12 = arith.constant 0 : index
    %9 = vector.load %arg3[%c0_9, %c1_10, %c0_11, %c0_12] : memref<1x3x128x256xf32, #tpu.memory_space<vmem>>, vector<1x1x128x256xf32>
    %10 = vector.shape_cast %9 : vector<1x1x128x256xf32> to vector<128x256xf32>
    %cst_13 = arith.constant dense<0.000000e+00> : vector<16x256xf32>
    %11 = tpu.matmul %8, %10, %cst_13 {dimension_numbers = #tpu.dot_dimension_numbers<[1], [0], [0], [1], [0, 0, 1, 1], [], []>} : vector<16x128xf32>, vector<128x256xf32>, vector<16x256xf32> -> vector<16x256xf32>
    %12 = arith.addf %6, %11 : vector<16x256xf32>
    %c0_14 = arith.constant 0 : index
    %c2 = arith.constant 2 : index
    %c0_15 = arith.constant 0 : index
    %13 = vector.load %arg2[%c0_14, %c2, %c0_15] : memref<1x18x128xf32, #tpu.memory_space<vmem>>, vector<1x16x128xf32>
    %14 = vector.shape_cast %13 : vector<1x16x128xf32> to vector<16x128xf32>
    %c0_16 = arith.constant 0 : index
    %c2_17 = arith.constant 2 : index
    %c0_18 = arith.constant 0 : index
    %c0_19 = arith.constant 0 : index
    %15 = vector.load %arg3[%c0_16, %c2_17, %c0_18, %c0_19] : memref<1x3x128x256xf32, #tpu.memory_space<vmem>>, vector<1x1x128x256xf32>
    %16 = vector.shape_cast %15 : vector<1x1x128x256xf32> to vector<128x256xf32>
    %cst_20 = arith.constant dense<0.000000e+00> : vector<16x256xf32>
    %17 = tpu.matmul %14, %16, %cst_20 {dimension_numbers = #tpu.dot_dimension_numbers<[1], [0], [0], [1], [0, 0, 1, 1], [], []>} : vector<16x128xf32>, vector<128x256xf32>, vector<16x256xf32> -> vector<16x256xf32>
    %18 = arith.addf %12, %17 : vector<16x256xf32>
    %c0_21 = arith.constant 0 : index
    %c0_22 = arith.constant 0 : index
    %19 = vector.load %arg4[%c0_21, %c0_22] : memref<1x256xf32, #tpu.memory_space<vmem>>, vector<1x256xf32>
    %20 = vector.broadcast %19 : vector<1x256xf32> to vector<16x256xf32>
    %21 = arith.addf %18, %20 : vector<16x256xf32>
    %cst_23 = arith.constant 0.000000e+00 : f32
    %22 = vector.broadcast %cst_23 : f32 to vector<16x256xf32>
    %23 = arith.maximumf %21, %22 : vector<16x256xf32>
    %c0_24 = arith.constant 0 : index
    %c0_25 = arith.constant 0 : index
    %c0_26 = arith.constant 0 : index
    %24 = vector.load %arg5[%c0_24, %c0_25, %c0_26] : memref<1x16x256xf32, #tpu.memory_space<vmem>>, vector<1x16x256xf32>
    %25 = vector.shape_cast %24 : vector<1x16x256xf32> to vector<16x256xf32>
    %26 = vector.shape_cast %23 : vector<16x256xf32> to vector<1x16x256xf32>
    tpu.vector_store %arg5[%c0_24, %c0_25, %c0_26], %26 {strides = array<i32>} : memref<1x16x256xf32, #tpu.memory_space<vmem>>, vector<1x16x256xf32>,
    return
  }
  func.func @transform_0(%arg0: i32, %arg1: i32) -> (i32, i32, i32) {
    %c0_i32 = arith.constant 0 : i32
    %c0_i32_0 = arith.constant 0 : i32
    %c0_i32_1 = arith.constant 0 : i32
    return %arg0, %c0_i32, %c0_i32_0 : i32, i32, i32
  }
  func.func @transform_1(%arg0: i32, %arg1: i32) -> (i32, i32, i32, i32) {
    %c0_i32 = arith.constant 0 : i32
    %c0_i32_0 = arith.constant 0 : i32
    %c0_i32_1 = arith.constant 0 : i32
    %c0_i32_2 = arith.constant 0 : i32
    return %arg1, %c0_i32, %c0_i32_0, %c0_i32_1 : i32, i32, i32, i32
  }
  func.func @transform_2(%arg0: i32, %arg1: i32) -> (i32, i32) {
    %c0_i32 = arith.constant 0 : i32
    %c0_i32_0 = arith.constant 0 : i32
    %c0_i32_1 = arith.constant 0 : i32
    return %c0_i32, %c0_i32_0 : i32, i32
  }
  func.func @transform_3(%arg0: i32, %arg1: i32) -> (i32, i32, i32) {
    %c0_i32 = arith.constant 0 : i32
    %c0_i32_0 = arith.constant 0 : i32
    return %arg0, %c0_i32, %arg1 : i32, i32, i32
  }
}

module attributes {stable_mosaic.version = 11 : i64} {
  func.func @_rowconv_relu_kernel(%arg0: i32, %arg1: i32, %arg2: memref<1x34x256xf32, #tpu.memory_space<vmem>>, %arg3: memref<1x3x256x256xf32, #tpu.memory_space<vmem>>, %arg4: memref<1x256xf32, #tpu.memory_space<vmem>>, %arg5: memref<1x32x256xf32, #tpu.memory_space<vmem>>) attributes {dimension_semantics = [#tpu.dimension_semantics<parallel>, #tpu.dimension_semantics<parallel>], iteration_bounds = array<i64: 2, 1>, scalar_prefetch = 0 : i64, scratch_operands = 0 : i64, tpu.core_type = #tpu.core_type<tc>, window_params = [{transform_indices = @transform_0, window_bounds = array<i64: 1, 34, 256>}, {transform_indices = @transform_1, window_bounds = array<i64: 1, 3, 256, 256>}, {pipeline_mode = #tpu.pipeline_mode<synchronous>, transform_indices = @transform_2, window_bounds = array<i64: 1, 256>}, {transform_indices = @transform_3, window_bounds = array<i64: 1, 32, 256>}]} {
    %cst = arith.constant 0.000000e+00 : f32
    %0 = vector.broadcast %cst : f32 to vector<32x256xf32>
    %c0 = arith.constant 0 : index
    %c0_0 = arith.constant 0 : index
    %c0_1 = arith.constant 0 : index
    %1 = vector.load %arg2[%c0, %c0_0, %c0_1] : memref<1x34x256xf32, #tpu.memory_space<vmem>>, vector<1x32x256xf32>
    %2 = vector.shape_cast %1 : vector<1x32x256xf32> to vector<32x256xf32>
    %c0_2 = arith.constant 0 : index
    %c0_3 = arith.constant 0 : index
    %c0_4 = arith.constant 0 : index
    %c0_5 = arith.constant 0 : index
    %3 = vector.load %arg3[%c0_2, %c0_3, %c0_4, %c0_5] : memref<1x3x256x256xf32, #tpu.memory_space<vmem>>, vector<1x1x256x256xf32>
    %4 = vector.shape_cast %3 : vector<1x1x256x256xf32> to vector<256x256xf32>
    %cst_6 = arith.constant dense<0.000000e+00> : vector<32x256xf32>
    %5 = tpu.matmul %2, %4, %cst_6 {dimension_numbers = #tpu.dot_dimension_numbers<[1], [0], [0], [1], [0, 0, 1, 1], [], []>} : vector<32x256xf32>, vector<256x256xf32>, vector<32x256xf32> -> vector<32x256xf32>
    %6 = arith.addf %0, %5 : vector<32x256xf32>
    %c0_7 = arith.constant 0 : index
    %c1 = arith.constant 1 : index
    %c0_8 = arith.constant 0 : index
    %7 = vector.load %arg2[%c0_7, %c1, %c0_8] : memref<1x34x256xf32, #tpu.memory_space<vmem>>, vector<1x32x256xf32>
    %8 = vector.shape_cast %7 : vector<1x32x256xf32> to vector<32x256xf32>
    %c0_9 = arith.constant 0 : index
    %c1_10 = arith.constant 1 : index
    %c0_11 = arith.constant 0 : index
    %c0_12 = arith.constant 0 : index
    %9 = vector.load %arg3[%c0_9, %c1_10, %c0_11, %c0_12] : memref<1x3x256x256xf32, #tpu.memory_space<vmem>>, vector<1x1x256x256xf32>
    %10 = vector.shape_cast %9 : vector<1x1x256x256xf32> to vector<256x256xf32>
    %cst_13 = arith.constant dense<0.000000e+00> : vector<32x256xf32>
    %11 = tpu.matmul %8, %10, %cst_13 {dimension_numbers = #tpu.dot_dimension_numbers<[1], [0], [0], [1], [0, 0, 1, 1], [], []>} : vector<32x256xf32>, vector<256x256xf32>, vector<32x256xf32> -> vector<32x256xf32>
    %12 = arith.addf %6, %11 : vector<32x256xf32>
    %c0_14 = arith.constant 0 : index
    %c2 = arith.constant 2 : index
    %c0_15 = arith.constant 0 : index
    %13 = vector.load %arg2[%c0_14, %c2, %c0_15] : memref<1x34x256xf32, #tpu.memory_space<vmem>>, vector<1x32x256xf32>
    %14 = vector.shape_cast %13 : vector<1x32x256xf32> to vector<32x256xf32>
    %c0_16 = arith.constant 0 : index
    %c2_17 = arith.constant 2 : index
    %c0_18 = arith.constant 0 : index
    %c0_19 = arith.constant 0 : index
    %15 = vector.load %arg3[%c0_16, %c2_17, %c0_18, %c0_19] : memref<1x3x256x256xf32, #tpu.memory_space<vmem>>, vector<1x1x256x256xf32>
    %16 = vector.shape_cast %15 : vector<1x1x256x256xf32> to vector<256x256xf32>
    %cst_20 = arith.constant dense<0.000000e+00> : vector<32x256xf32>
    %17 = tpu.matmul %14, %16, %cst_20 {dimension_numbers = #tpu.dot_dimension_numbers<[1], [0], [0], [1], [0, 0, 1, 1], [], []>} : vector<32x256xf32>, vector<256x256xf32>, vector<32x256xf32> -> vector<32x256xf32>
    %18 = arith.addf %12, %17 : vector<32x256xf32>
    %c0_21 = arith.constant 0 : index
    %c0_22 = arith.constant 0 : index
    %19 = vector.load %arg4[%c0_21, %c0_22] : memref<1x256xf32, #tpu.memory_space<vmem>>, vector<1x256xf32>
    %20 = vector.broadcast %19 : vector<1x256xf32> to vector<32x256xf32>
    %21 = arith.addf %18, %20 : vector<32x256xf32>
    %cst_23 = arith.constant 0.000000e+00 : f32
    %22 = vector.broadcast %cst_23 : f32 to vector<32x256xf32>
    %23 = arith.maximumf %21, %22 : vector<32x256xf32>
    %c0_24 = arith.constant 0 : index
    %c0_25 = arith.constant 0 : index
    %c0_26 = arith.constant 0 : index
    %24 = vector.load %arg5[%c0_24, %c0_25, %c0_26] : memref<1x32x256xf32, #tpu.memory_space<vmem>>, vector<1x32x256xf32>
    %25 = vector.shape_cast %24 : vector<1x32x256xf32> to vector<32x256xf32>
    %26 = vector.shape_cast %23 : vector<32x256xf32> to vector<1x32x256xf32>
    tpu.vector_store %arg5[%c0_24, %c0_25, %c0_26], %26 {strides = array<i32>} : memref<1x32x256xf32, #tpu.memory_space<vmem>>, vector<1x32x256xf32>,
    return
  }
  func.func @transform_0(%arg0: i32, %arg1: i32) -> (i32, i32, i32) {
    %c0_i32 = arith.constant 0 : i32
    %c0_i32_0 = arith.constant 0 : i32
    %c0_i32_1 = arith.constant 0 : i32
    return %arg0, %c0_i32, %c0_i32_0 : i32, i32, i32
  }
  func.func @transform_1(%arg0: i32, %arg1: i32) -> (i32, i32, i32, i32) {
    %c0_i32 = arith.constant 0 : i32
    %c0_i32_0 = arith.constant 0 : i32
    %c0_i32_1 = arith.constant 0 : i32
    %c0_i32_2 = arith.constant 0 : i32
    return %arg1, %c0_i32, %c0_i32_0, %c0_i32_1 : i32, i32, i32, i32
  }
  func.func @transform_2(%arg0: i32, %arg1: i32) -> (i32, i32) {
    %c0_i32 = arith.constant 0 : i32
    %c0_i32_0 = arith.constant 0 : i32
    %c0_i32_1 = arith.constant 0 : i32
    return %c0_i32, %c0_i32_0 : i32, i32
  }
  func.func @transform_3(%arg0: i32, %arg1: i32) -> (i32, i32, i32) {
    %c0_i32 = arith.constant 0 : i32
    %c0_i32_0 = arith.constant 0 : i32
    return %arg0, %c0_i32, %arg1 : i32, i32, i32
  }
}

</mosaic_0001>

<bundles_post_ra>
// kernel: _lambda_.3
= control target key start
LH: loop header
LB: loop body
LE: loop exit
PB: predicated region body
PF: predicated region fallthrough
CT: control target
= control target key end

     0   :  { %s544_s12 = smov 0   ;;  %s546_s13 = smov 0   ;;  %s641_s0 = inlined_call_operand.vmem [shape: f32[2,10,64], index: 0, kind: input, shape index: {}]   ;;  %s642_s1 = inlined_call_operand.vmem [shape: f32[2,3,64,128], index: 1, kind: input, shape index: {}]   ;;  %s643_s2 = inlined_call_operand.vmem [shape: f32[1,128], index: 2, kind: input, shape index: {}]   ;;  %s644_s3 = inlined_call_operand.vmem [shape: f32[2,8,256], index: 3, kind: output, shape index: {}]  }
   0x1   :  { %s548_s14 = smov 0   ;;  %s550_s15 = smov 0  }
   0x2   :  { %s552_s16 = smov 0  }
   0x3 LB: > { %s22_s17 = sadd.s32 1, %s514_s14  ;;  %s25_s18 = sadd.s32 1, %s518_s15  ;;  %s522_s16 = sphi %s552_s16, %s13_s16   ;;  %s518_s15 = sphi %s550_s15, %s648_s15   ;;  %s514_s14 = sphi %s548_s14, %s647_s14   ;;  %s510_s13 = sphi %s546_s13, %s646_s13   ;;  %s506_s12 = sphi %s544_s12, %s645_s12  }
   0x4   : > { %p23_p0 = scmp.ge.s32.totalorder %s22_s17, 2  ;;  %p414_p1 = scmp.ge.s32.totalorder %s522_s16, 1 }
   0x5   : > { %p161_p2 = scmp.lt.s32.totalorder %s522_s16, 5 }
   0x6   : > { %s650_s17 = smov (%p23_p0, %s22_s17), 0  ;;  %s652_s18 = smov (!%p23_p0, %s25_s18), %s518_s15 }
   0x7   : > { %p162_p3 = pnand %p414_p1, %p161_p2  ;;  %p27_p4 = scmp.ge.s32.totalorder %s652_s18, 2 }
   0x8   : > { %p198_p5 = scmp.lt.s32.totalorder (!%p162_p3), %s506_s12, 1  ;;  %p193_p6 = scmp.lt.s32.totalorder (!%p162_p3), %s510_s13, 1 }
   0x9   : > { %s654_s18 = smov (%p27_p4, %s652_s18), 0  ;;  %165 = sbr.rel (%p162_p3) target bundleno = 173 (0xad), region = 32 }
   0xe   : > { %s656_s12 = smov (!%p198_p5, %s506_s12), 1  ;;  %s658_s13 = smov (!%p193_p6, %s510_s13), 1  ;;  %vm230_vm0 = vcmask 523264   ;;  %v483_v30 = vld [vmem:[%s643_s2] ss:$0 sm:$0xff] }
   0xf   : > { %s442_s19 = smul.u32 192, %s656_s12  ;;  %s441_s23 = sshll.u32 %s658_s13, 4 }
  0x10   : > { %s197_s26 = scalar_lea.vmem %s641_s0, %s441_s23  ;;  %s418_s27 = sshll.u32 %s658_s13, 1 }
  0x11   : > { %s582_s22 = scalar_lea.vmem %s642_s1, %s442_s19  ;;  %v277_v23 = vld [vmem:[%s197_s26 + $0x2] sm:$0xff]  ;;  %s208_s28 = sadd.s32 %s418_s27, %s656_s12 }
  0x12   : > { %v437_v0 = vld [vmem:[%s582_s22 + $0xb8] sm:$0xff]  ;;  %v436_v1 = vld [vmem:[%s582_s22 + $0xb0] sm:$0xff]  ;;  %v435_v5 = vld [vmem:[%s582_s22 + $0xa8] sm:$0xff]  ;;  %s419_s4 = sshll.u32 %s208_s28, 3 }
  0x13   : > { %v427_v2 = vld [vmem:[%s582_s22 + $0x78] sm:$0xff]  ;;  %298 = vmatpush.msra.mxu2 %v437_v0  ;;  %v426_v4 = vld [vmem:[%s582_s22 + $0x70] sm:$0xff]  ;;  %v425_v7 = vld [vmem:[%s582_s22 + $0x68] sm:$0xff]  ;;  %s210_s7 = scalar_lea.vmem %s644_s3, %s419_s4 }
  0x14   : > { %242 = vmatpush.msra.mxu0 %v427_v2  ;;  %v219_v3 = vld [vmem:[%s582_s22 + $0x38] sm:$0xff]  ;;  %v218_v6 = vld [vmem:[%s582_s22 + $0x30] sm:$0xff]  ;;  %v217_v8 = vld [vmem:[%s582_s22 + $0x28] sm:$0xff] }
  0x15   : > { %265 = vmatpush.msra.mxu1 %v219_v3  ;;  %299 = vmatpush.msra.mxu2 %v436_v1  ;;  %v434_v9 = vld [vmem:[%s582_s22 + $0xa0] sm:$0xff]  ;;  %v433_v12 = vld [vmem:[%s582_s22 + $0x98] sm:$0xff]  ;;  %v432_v15 = vld [vmem:[%s582_s22 + $0x90] sm:$0xff] }
  0x16   : > { %243 = vmatpush.msra.mxu0 %v426_v4  ;;  %v424_v10 = vld [vmem:[%s582_s22 + $0x60] sm:$0xff]  ;;  %v423_v13 = vld [vmem:[%s582_s22 + $0x58] sm:$0xff]  ;;  %v422_v16 = vld [vmem:[%s582_s22 + $0x50] sm:$0xff] }
  0x17   : > { %266 = vmatpush.msra.mxu1 %v218_v6  ;;  %300 = vmatpush.msra.mxu2 %v435_v5  ;;  %v216_v11 = vld [vmem:[%s582_s22 + $0x20] sm:$0xff]  ;;  %v215_v14 = vld [vmem:[%s582_s22 + $0x18] sm:$0xff]  ;;  %v214_v17 = vld [vmem:[%s582_s22 + $0x10] sm:$0xff] }
  0x18   : > { %244 = vmatpush.msra.mxu0 %v425_v7  ;;  %v431_v18 = vld [vmem:[%s582_s22 + $0x88] sm:$0xff]  ;;  %v430_v21 = vld [vmem:[%s582_s22 + $0x80] sm:$0xff] }
  0x19   : > { %267 = vmatpush.msra.mxu1 %v217_v8  ;;  %301 = vmatpush.msra.mxu2 %v434_v9  ;;  %v421_v19 = vld [vmem:[%s582_s22 + $0x48] sm:$0xff]  ;;  %v420_v22 = vld [vmem:[%s582_s22 + $0x40] sm:$0xff] }
  0x1a   : > { %245 = vmatpush.msra.mxu0 %v424_v10  ;;  %v213_v20 = vld [vmem:[%s582_s22 + $0x8] sm:$0xff]  ;;  %v212_v24 = vld [vmem:[%s582_s22] sm:$0xff] }
  0x1b   : > { %268 = vmatpush.msra.mxu1 %v216_v11  ;;  %302 = vmatpush.msra.mxu2 %v433_v12  ;;  %v220_v25 = vld [vmem:[%s197_s26 + $0x1] sm:$0xff] }
  0x1c   : > { %246 = vmatpush.msra.mxu0 %v423_v13  ;;  %v211_v26 = vld [vmem:[%s197_s26] sm:$0xff] }
  0x1d   : > { %269 = vmatpush.msra.mxu1 %v215_v14  ;;  %303 = vmatpush.msra.mxu2 %v432_v15 }
  0x1e   : > { %247 = vmatpush.msra.mxu0 %v422_v16 }
  0x1f   : > { %270 = vmatpush.msra.mxu1 %v214_v17  ;;  %304 = vmatpush.msra.mxu2 %v431_v18 }
  0x20   : > { %248 = vmatpush.msra.mxu0 %v421_v19 }
  0x21   : > { %271 = vmatpush.msra.mxu1 %v213_v20  ;;  %305 = vmatpush.msra.mxu2 %v430_v21 }
  0x22   : > { %249 = vmatpush.msra.mxu0 %v420_v22  ;;  %438 = vmatmul.msk.f32.vlgmr.msra.gmra.mxu2 %vm230_vm0, %v277_v23 }
  0x23   : > { %272 = vmatpush.msra.mxu1 %v212_v24  ;;  %428 = vmatmul.msk.f32.vlgmr.msra.gmra.mxu0 %vm230_vm0, %v220_v25 }
  0x24   : > { %429 = vmatmul.msk.f32.vlgmr.msra.gmra.mxu1 %vm230_vm0, %v211_v26 }
  0xa0   : > { %v251_v27 = vpop.f32.mrf.mxu0 }
  0xa1   : > { %v274_v28 = vpop.f32.mrf.mxu1 }
  0xa2   : > { %v275_v29 = vadd.f32 %v274_v28, %v251_v27 }
  0xa5   : > { %v307_v31 = vpop.f32.mrf.mxu2 }
  0xa6   : > { %v310_v32 = vadd.f32 %v307_v31, %v275_v29 }
  0xa8   : > { %v315_v33 = vadd.f32 %v483_v30, %v310_v32 }
  0xaa   : > { %v316_v34 = vmax.f32 %v315_v33, 0.0 }
  0xac   : > { %317 = vst [vmem:[%s210_s7] sm:$0xff] %v316_v34 }
  0xad PF: > { %s13_s16 = sadd.s32 1, %s522_s16   ;;  %s645_s12 = smov %s514_s14 }
  0xae   : > { %p10_p7 = scmp.ge.s32.totalorder %s13_s16, 6   ;;  %s646_s13 = smov %s518_s15 }
  0xaf   : > { %s647_s14 = smov %s650_s17  ;;  %s648_s15 = smov %s654_s18 }
  0xb0   :  { %12 = sbr.rel (!%p10_p7) target bundleno = 3 (0x3), region = 67 }

// kernel: _lambda_.4
= control target key start
LH: loop header
LB: loop body
LE: loop exit
PB: predicated region body
PF: predicated region fallthrough
CT: control target
= control target key end

     0   :  { %s820_s12 = smov 0   ;;  %s822_s13 = smov 0   ;;  %s1027_s0 = inlined_call_operand.vmem [shape: f32[2,18,128], index: 0, kind: input, shape index: {}]   ;;  %s1028_s1 = inlined_call_operand.vmem [shape: f32[2,3,128,256], index: 1, kind: input, shape index: {}]   ;;  %s1029_s2 = inlined_call_operand.vmem [shape: f32[1,256], index: 2, kind: input, shape index: {}]   ;;  %s1030_s3 = inlined_call_operand.vmem [shape: f32[2,16,512], index: 3, kind: output, shape index: {}]  }
   0x1   :  { %s824_s14 = smov 0   ;;  %s826_s15 = smov 0  }
   0x2   :  { %s828_s16 = smov 0   ;;  %s830_s17 = smov 0  }
   0x3   :  { %s832_s18 = smov 0  }
   0x4 LB: > { %s22_s19 = sadd.s32 1, %s790_s16  ;;  %s25_s20 = sadd.s32 1, %s794_s17  ;;  %s798_s18 = sphi %s832_s18, %s13_s18   ;;  %s794_s17 = sphi %s830_s17, %s1037_s17   ;;  %s790_s16 = sphi %s828_s16, %s1036_s16   ;;  %s786_s15 = sphi %s826_s15, %s1035_s15   ;;  %s782_s14 = sphi %s824_s14, %s1034_s14   ;;  %s778_s13 = sphi %s822_s13, %s1033_s13   ;;  %s774_s12 = sphi %s820_s12, %s1032_s12  }
   0x5   : > { %p23_p0 = scmp.ge.s32.totalorder %s22_s19, 2  ;;  %s576_s21 = sadd.s32 4294967295, %s798_s18  }
   0x6   : > { %p117_p1 = scmp.ne.s32.totalorder %s778_s13, %s774_s12  ;;  %p118_p2 = scmp.eq.s32.totalorder %s576_s21, 3 }
   0x7   : > { %s1039_s19 = smov (%p23_p0, %s22_s19), 0  ;;  %s1041_s20 = smov (!%p23_p0, %s25_s20), %s794_s17 }
   0x8   : > { %s103_s22 = ssub.s32 %s790_s16, %s1039_s19  ;;  %p27_p3 = scmp.ge.s32.totalorder %s1041_s20, 2 }
   0x9   : > { %p580_p4 = scmp.ge.s32.totalorder %s798_s18, 1  ;;  %p866_p5 = por %p118_p2, %p117_p1 }
   0xa   : > { %p161_p6 = scmp.lt.s32.totalorder %s798_s18, 5  ;;  %s1043_s20 = smov (%p27_p3, %s1041_s20), 0 }
   0xb   : > { %s102_s24 = ssub.s32 %s794_s17, %s1043_s20  ;;  %s107_s26 = sadd.s32 1, %s778_s13 }
   0xc   : > { %p162_p7 = pnand %p580_p4, %p161_p6  ;;  %s104_s25 = sor.u32 %s103_s22, %s102_s24 }
   0xd   : > { %p105_p8 = scmp.eq.s32.totalorder %s104_s25, 0  ;;  %p194_p9 = scmp.lt.s32.totalorder (!%p162_p7), %s782_s14, 1 }
   0xe   : > { %165 = sbr.rel (%p162_p7) target bundleno = 241 (0xf1), region = 32  ;;  %p189_p10 = scmp.lt.s32.totalorder (!%p162_p7), %s786_s15, 1 }
   0xf   : > { %s877_s27 = scalar_select %p105_p8, %s778_s13, %s107_s26  }
  0x10   : > { %s186_s22 = sand.u32 (!%p162_p7), 1, %s774_s12  }
  0x11   : > { %s581_s24 = sshll.u32 (!%p162_p7), %s186_s22, 5 }
  0x12   : > { %s188_s25 = scalar_lea.vmem (!%p162_p7), [#allocation2], %s581_s24 }
  0x13   : > { %s195_s28 = scalar_select %p194_p9, %s782_s14, 1 }
  0x14   : > { %s190_s6 = scalar_select %p189_p10, %s786_s15, 1 }
  0x15   : > { %s687_s29 = smul.u32 768, %s195_s28  ;;  %s649_s12 = sshll.u32 (%p866_p5), %s782_s14, 1 }
  0x16   : > { %s686_s7 = smul.u32 24, %s190_s6  ;;  %s650_s26 = sshll.u32 (%p866_p5), %s786_s15, 3 }
  0x17   : > { %s884_s5 = scalar_lea.vmem %s1028_s1, %s687_s29  ;;  %s473_s28 = sadd.s32 (%p866_p5), %s650_s26, %s649_s12 }
  0x18   : > { %v614_v0 = vld [vmem:[%s884_s5 + $0x1f0] sm:$0xff]  ;;  %v615_v1 = vld [vmem:[%s884_s5 + $0x1f8] sm:$0xff]  ;;  %v612_v4 = vld [vmem:[%s884_s5 + $0x1e0] sm:$0xff]  ;;  %s969_s10 = scalar_lea.vmem %s1027_s0, %s686_s7  ;;  %s651_s29 = sshll.u32 (%p866_p5), %s473_s28, 3 }
  0x19   : > { %v232_v2 = vld [vmem:[%s884_s5 + $0xf0] sm:$0xff]  ;;  %269 = vmatpush.msra.mxu0 %v614_v0  ;;  %292 = vmatpush.msra.mxu1 %v615_v1  ;;  %v233_v3 = vld [vmem:[%s884_s5 + $0xf8] sm:$0xff]  ;;  %v613_v5 = vld [vmem:[%s884_s5 + $0x1e8] sm:$0xff] }
  0x1a   : > { %315 = vmatpush.msra.mxu2 %v232_v2  ;;  %338 = vmatpush.msra.mxu3 %v233_v3  ;;  %v230_v6 = vld [vmem:[%s884_s5 + $0xe0] sm:$0xff]  ;;  %v231_v7 = vld [vmem:[%s884_s5 + $0xe8] sm:$0xff]  ;;  %v610_v8 = vld [vmem:[%s884_s5 + $0x1d0] sm:$0xff] }
  0x1b   : > { %270 = vmatpush.msra.mxu0 %v612_v4  ;;  %293 = vmatpush.msra.mxu1 %v613_v5  ;;  %v611_v9 = vld [vmem:[%s884_s5 + $0x1d8] sm:$0xff]  ;;  %v228_v10 = vld [vmem:[%s884_s5 + $0xd0] sm:$0xff]  ;;  %v608_v12 = vld [vmem:[%s884_s5 + $0x1c0] sm:$0xff] }
  0x1c   : > { %v229_v11 = vld [vmem:[%s884_s5 + $0xd8] sm:$0xff]  ;;  %316 = vmatpush.msra.mxu2 %v230_v6  ;;  %339 = vmatpush.msra.mxu3 %v231_v7  ;;  %v609_v13 = vld [vmem:[%s884_s5 + $0x1c8] sm:$0xff]  ;;  %v226_v14 = vld [vmem:[%s884_s5 + $0xc0] sm:$0xff] }
  0x1d   : > { %271 = vmatpush.msra.mxu0 %v610_v8  ;;  %294 = vmatpush.msra.mxu1 %v611_v9  ;;  %v227_v15 = vld [vmem:[%s884_s5 + $0xc8] sm:$0xff]  ;;  %v606_v16 = vld [vmem:[%s884_s5 + $0x1b0] sm:$0xff]  ;;  %v607_v17 = vld [vmem:[%s884_s5 + $0x1b8] sm:$0xff] }
  0x1e   : > { %317 = vmatpush.msra.mxu2 %v228_v10  ;;  %340 = vmatpush.msra.mxu3 %v229_v11  ;;  %v224_v18 = vld [vmem:[%s884_s5 + $0xb0] sm:$0xff]  ;;  %v225_v19 = vld [vmem:[%s884_s5 + $0xb8] sm:$0xff]  ;;  %v604_v20 = vld [vmem:[%s884_s5 + $0x1a0] sm:$0xff] }
  0x1f   : > { %272 = vmatpush.msra.mxu0 %v608_v12  ;;  %295 = vmatpush.msra.mxu1 %v609_v13  ;;  %v605_v21 = vld [vmem:[%s884_s5 + $0x1a8] sm:$0xff]  ;;  %v222_v22 = vld [vmem:[%s884_s5 + $0xa0] sm:$0xff]  ;;  %v602_v24 = vld [vmem:[%s884_s5 + $0x190] sm:$0xff] }
  0x20   : > { %318 = vmatpush.msra.mxu2 %v226_v14  ;;  %341 = vmatpush.msra.mxu3 %v227_v15  ;;  %v223_v23 = vld [vmem:[%s884_s5 + $0xa8] sm:$0xff]  ;;  %v603_v25 = vld [vmem:[%s884_s5 + $0x198] sm:$0xff]  ;;  %v220_v26 = vld [vmem:[%s884_s5 + $0x90] sm:$0xff] }
  0x21   : > { %273 = vmatpush.msra.mxu0 %v606_v16  ;;  %296 = vmatpush.msra.mxu1 %v607_v17  ;;  %v221_v27 = vld [vmem:[%s884_s5 + $0x98] sm:$0xff]  ;;  %v600_v28 = vld [vmem:[%s884_s5 + $0x180] sm:$0xff]  ;;  %v601_v29 = vld [vmem:[%s884_s5 + $0x188] sm:$0xff] }
  0x22   : > { %319 = vmatpush.msra.mxu2 %v224_v18  ;;  %342 = vmatpush.msra.mxu3 %v225_v19  ;;  %v218_v30 = vld [vmem:[%s884_s5 + $0x80] sm:$0xff]  ;;  %v219_v31 = vld [vmem:[%s884_s5 + $0x88] sm:$0xff]  ;;  %v598_v32 = vld [vmem:[%s884_s5 + $0x170] sm:$0xff] }
  0x23   : > { %274 = vmatpush.msra.mxu0 %v604_v20  ;;  %297 = vmatpush.msra.mxu1 %v605_v21  ;;  %v599_v33 = vld [vmem:[%s884_s5 + $0x178] sm:$0xff]  ;;  %v216_v34 = vld [vmem:[%s884_s5 + $0x70] sm:$0xff]  ;;  %v596_v36 = vld [vmem:[%s884_s5 + $0x160] sm:$0xff] }
  0x24   : > { %320 = vmatpush.msra.mxu2 %v222_v22  ;;  %343 = vmatpush.msra.mxu3 %v223_v23  ;;  %v217_v35 = vld [vmem:[%s884_s5 + $0x78] sm:$0xff]  ;;  %v597_v37 = vld [vmem:[%s884_s5 + $0x168] sm:$0xff]  ;;  %v214_v38 = vld [vmem:[%s884_s5 + $0x60] sm:$0xff] }
  0x25   : > { %275 = vmatpush.msra.mxu0 %v602_v24  ;;  %298 = vmatpush.msra.mxu1 %v603_v25  ;;  %v215_v39 = vld [vmem:[%s884_s5 + $0x68] sm:$0xff]  ;;  %v594_v40 = vld [vmem:[%s884_s5 + $0x150] sm:$0xff]  ;;  %v595_v41 = vld [vmem:[%s884_s5 + $0x158] sm:$0xff] }
  0x26   : > { %321 = vmatpush.msra.mxu2 %v220_v26  ;;  %344 = vmatpush.msra.mxu3 %v221_v27  ;;  %v212_v42 = vld [vmem:[%s884_s5 + $0x50] sm:$0xff]  ;;  %v213_v43 = vld [vmem:[%s884_s5 + $0x58] sm:$0xff]  ;;  %v592_v44 = vld [vmem:[%s884_s5 + $0x140] sm:$0xff] }
  0x27   : > { %276 = vmatpush.msra.mxu0 %v600_v28  ;;  %299 = vmatpush.msra.mxu1 %v601_v29  ;;  %v593_v45 = vld [vmem:[%s884_s5 + $0x148] sm:$0xff]  ;;  %v210_v46 = vld [vmem:[%s884_s5 + $0x40] sm:$0xff]  ;;  %v590_v48 = vld [vmem:[%s884_s5 + $0x130] sm:$0xff] }
  0x28   : > { %322 = vmatpush.msra.mxu2 %v218_v30  ;;  %345 = vmatpush.msra.mxu3 %v219_v31  ;;  %v211_v47 = vld [vmem:[%s884_s5 + $0x48] sm:$0xff]  ;;  %v591_v49 = vld [vmem:[%s884_s5 + $0x138] sm:$0xff]  ;;  %v208_v50 = vld [vmem:[%s884_s5 + $0x30] sm:$0xff] }
  0x29   : > { %277 = vmatpush.msra.mxu0 %v598_v32  ;;  %300 = vmatpush.msra.mxu1 %v599_v33  ;;  %v209_v51 = vld [vmem:[%s884_s5 + $0x38] sm:$0xff]  ;;  %v588_v52 = vld [vmem:[%s884_s5 + $0x120] sm:$0xff]  ;;  %v589_v53 = vld [vmem:[%s884_s5 + $0x128] sm:$0xff] }
  0x2a   : > { %323 = vmatpush.msra.mxu2 %v216_v34  ;;  %346 = vmatpush.msra.mxu3 %v217_v35  ;;  %v206_v54 = vld [vmem:[%s884_s5 + $0x20] sm:$0xff]  ;;  %v207_v55 = vld [vmem:[%s884_s5 + $0x28] sm:$0xff]  ;;  %v586_v56 = vld [vmem:[%s884_s5 + $0x110] sm:$0xff] }
  0x2b   : > { %278 = vmatpush.msra.mxu0 %v596_v36  ;;  %301 = vmatpush.msra.mxu1 %v597_v37  ;;  %v587_v57 = vld [vmem:[%s884_s5 + $0x118] sm:$0xff]  ;;  %v204_v58 = vld [vmem:[%s884_s5 + $0x10] sm:$0xff]  ;;  %v584_v60 = vld [vmem:[%s884_s5 + $0x100] sm:$0xff] }
  0x2c   : > { %324 = vmatpush.msra.mxu2 %v214_v38  ;;  %347 = vmatpush.msra.mxu3 %v215_v39  ;;  %v205_v59 = vld [vmem:[%s884_s5 + $0x18] sm:$0xff]  ;;  %v585_v61 = vld [vmem:[%s884_s5 + $0x108] sm:$0xff]  ;;  %v202_v62 = vld [vmem:[%s884_s5] sm:$0xff] }
  0x2d   : > { %279 = vmatpush.msra.mxu0 %v594_v40  ;;  %302 = vmatpush.msra.mxu1 %v595_v41  ;;  %v203_v63 = vld [vmem:[%s884_s5 + $0x8] sm:$0xff]  ;;  %v646_v0 = vld [vmem:[%s884_s5 + $0x2f0] sm:$0xff]  ;;  %v647_v1 = vld [vmem:[%s884_s5 + $0x2f8] sm:$0xff] }
  0x2e   : > { %325 = vmatpush.msra.mxu2 %v212_v42  ;;  %348 = vmatpush.msra.mxu3 %v213_v43  ;;  %v644_v2 = vld [vmem:[%s884_s5 + $0x2e0] sm:$0xff]  ;;  %v645_v3 = vld [vmem:[%s884_s5 + $0x2e8] sm:$0xff]  ;;  %v642_v4 = vld [vmem:[%s884_s5 + $0x2d0] sm:$0xff] }
  0x2f   : > { %280 = vmatpush.msra.mxu0 %v592_v44  ;;  %303 = vmatpush.msra.mxu1 %v593_v45  ;;  %v643_v5 = vld [vmem:[%s884_s5 + $0x2d8] sm:$0xff]  ;;  %v640_v6 = vld [vmem:[%s884_s5 + $0x2c0] sm:$0xff]  ;;  %v641_v7 = vld [vmem:[%s884_s5 + $0x2c8] sm:$0xff] }
  0x30   : > { %326 = vmatpush.msra.mxu2 %v210_v46  ;;  %349 = vmatpush.msra.mxu3 %v211_v47  ;;  %v638_v8 = vld [vmem:[%s884_s5 + $0x2b0] sm:$0xff]  ;;  %v639_v9 = vld [vmem:[%s884_s5 + $0x2b8] sm:$0xff]  ;;  %v636_v10 = vld [vmem:[%s884_s5 + $0x2a0] sm:$0xff] }
  0x31   : > { %281 = vmatpush.msra.mxu0 %v590_v48  ;;  %304 = vmatpush.msra.mxu1 %v591_v49  ;;  %v637_v11 = vld [vmem:[%s884_s5 + $0x2a8] sm:$0xff]  ;;  %v634_v12 = vld [vmem:[%s884_s5 + $0x290] sm:$0xff]  ;;  %v635_v13 = vld [vmem:[%s884_s5 + $0x298] sm:$0xff] }
  0x32   : > { %327 = vmatpush.msra.mxu2 %v208_v50  ;;  %350 = vmatpush.msra.mxu3 %v209_v51  ;;  %v632_v14 = vld [vmem:[%s884_s5 + $0x280] sm:$0xff]  ;;  %v633_v15 = vld [vmem:[%s884_s5 + $0x288] sm:$0xff]  ;;  %v630_v18 = vld [vmem:[%s884_s5 + $0x270] sm:$0xff] }
  0x33   : > { %282 = vmatpush.msra.mxu0 %v588_v52  ;;  %305 = vmatpush.msra.mxu1 %v589_v53  ;;  %v234_v16 = vld [vmem:[%s969_s10 + $0x1] sm:$0xff]  ;;  %v631_v19 = vld [vmem:[%s884_s5 + $0x278] sm:$0xff]  ;;  %v626_v22 = vld [vmem:[%s884_s5 + $0x250] sm:$0xff] }
  0x34   : > { %328 = vmatpush.msra.mxu2 %v206_v54  ;;  %351 = vmatpush.msra.mxu3 %v207_v55  ;;  %v200_v17 = vld [vmem:[%s969_s10] sm:$0xff]  ;;  %v629_v21 = vld [vmem:[%s884_s5 + $0x268] sm:$0xff]  ;;  %v627_v23 = vld [vmem:[%s884_s5 + $0x258] sm:$0xff] }
  0x35   : > { %283 = vmatpush.msra.mxu0 %v586_v56  ;;  %306 = vmatpush.msra.mxu1 %v587_v57  ;;  %v628_v20 = vld [vmem:[%s884_s5 + $0x260] sm:$0xff]  ;;  %v625_v25 = vld [vmem:[%s884_s5 + $0x248] sm:$0xff]  ;;  %v622_v28 = vld [vmem:[%s884_s5 + $0x230] sm:$0xff] }
  0x36   : > { %329 = vmatpush.msra.mxu2 %v204_v58  ;;  %352 = vmatpush.msra.mxu3 %v205_v59  ;;  %v624_v24 = vld [vmem:[%s884_s5 + $0x240] sm:$0xff]  ;;  %v235_v26 = vld [vmem:[%s969_s10 + $0x9] sm:$0xff]  ;;  %v623_v29 = vld [vmem:[%s884_s5 + $0x238] sm:$0xff] }
  0x37   : > { %284 = vmatpush.msra.mxu0 %v584_v60  ;;  %307 = vmatpush.msra.mxu1 %v585_v61  ;;  %v201_v27 = vld [vmem:[%s969_s10 + $0x8] sm:$0xff]  ;;  %v620_v30 = vld [vmem:[%s884_s5 + $0x220] sm:$0xff]  ;;  %v618_v32 = vld [vmem:[%s884_s5 + $0x210] sm:$0xff] }
  0x38   : > { %330 = vmatpush.msra.mxu2 %v202_v62  ;;  %353 = vmatpush.msra.mxu3 %v203_v63  ;;  %v621_v31 = vld [vmem:[%s884_s5 + $0x228] sm:$0xff]  ;;  %v619_v33 = vld [vmem:[%s884_s5 + $0x218] sm:$0xff]  ;;  %v616_v34 = vld [vmem:[%s884_s5 + $0x200] sm:$0xff] }
  0x39   : > { %396 = vmatpush.msrb.mxu0 %v646_v0  ;;  %419 = vmatpush.msrb.mxu1 %v647_v1  ;;  %v617_v35 = vld [vmem:[%s884_s5 + $0x208] sm:$0xff]  ;;  %v446_v44 = vld [vmem:[%s1029_s2] sm:$0x3]  ;;  %s475_s5 = scalar_lea.vmem (%p866_p5), %s1030_s3, %s651_s29 }
  0x3a   : > { %654 = vmatpush.msrb.mxu2 %v646_v0  ;;  %670 = vmatpush.msrb.mxu3 %v647_v1  ;;  %v361_v36 = vld [vmem:[%s969_s10 + $0x2] sm:$0xff]  ;;  %v362_v37 = vld [vmem:[%s969_s10 + $0xa] sm:$0xff]  ;;  %v448_v48 = vperm.slane %v446_v44, 0  ;;  %v449_v51 = vperm.slane %v446_v44, 1 }
  0x3b   : > { %397 = vmatpush.msrb.mxu0 %v644_v2  ;;  %420 = vmatpush.msrb.mxu1 %v645_v3 }
  0x3c   : > { %655 = vmatpush.msrb.mxu2 %v644_v2  ;;  %671 = vmatpush.msrb.mxu3 %v645_v3 }
  0x3d   : > { %398 = vmatpush.msrb.mxu0 %v642_v4  ;;  %421 = vmatpush.msrb.mxu1 %v643_v5 }
  0x3e   : > { %656 = vmatpush.msrb.mxu2 %v642_v4  ;;  %672 = vmatpush.msrb.mxu3 %v643_v5 }
  0x3f   : > { %399 = vmatpush.msrb.mxu0 %v640_v6  ;;  %422 = vmatpush.msrb.mxu1 %v641_v7 }
  0x40   : > { %657 = vmatpush.msrb.mxu2 %v640_v6  ;;  %673 = vmatpush.msrb.mxu3 %v641_v7 }
  0x41   : > { %400 = vmatpush.msrb.mxu0 %v638_v8  ;;  %423 = vmatpush.msrb.mxu1 %v639_v9 }
  0x42   : > { %658 = vmatpush.msrb.mxu2 %v638_v8  ;;  %674 = vmatpush.msrb.mxu3 %v639_v9 }
  0x43   : > { %401 = vmatpush.msrb.mxu0 %v636_v10  ;;  %424 = vmatpush.msrb.mxu1 %v637_v11 }
  0x44   : > { %659 = vmatpush.msrb.mxu2 %v636_v10  ;;  %675 = vmatpush.msrb.mxu3 %v637_v11 }
  0x45   : > { %402 = vmatpush.msrb.mxu0 %v634_v12  ;;  %425 = vmatpush.msrb.mxu1 %v635_v13 }
  0x46   : > { %660 = vmatpush.msrb.mxu2 %v634_v12  ;;  %676 = vmatpush.msrb.mxu3 %v635_v13 }
  0x47   : > { %403 = vmatpush.msrb.mxu0 %v632_v14  ;;  %426 = vmatpush.msrb.mxu1 %v633_v15 }
  0x48   : > { %661 = vmatpush.msrb.mxu2 %v632_v14  ;;  %677 = vmatpush.msrb.mxu3 %v633_v15 }
  0x49   : > { %285 = vmatmul.f32.vlgmr.msra.gmra.mxu0 %v234_v16  ;;  %308 = vmatmul.f32.vlgmr.msra.gmra.mxu1 %v234_v16 }
  0x4a   : > { %331 = vmatmul.f32.vlgmr.msra.gmra.mxu2 %v200_v17  ;;  %354 = vmatmul.f32.vlgmr.msra.gmra.mxu3 %v200_v17 }
  0x4b   : > { %404 = vmatpush.msrb.mxu0 %v630_v18  ;;  %662 = vmatpush.msrb.mxu2 %v630_v18 }
  0x4c   : > { %427 = vmatpush.msrb.mxu1 %v631_v19  ;;  %678 = vmatpush.msrb.mxu3 %v631_v19 }
  0x4d   : > { %405 = vmatpush.msrb.mxu0 %v628_v20  ;;  %663 = vmatpush.msrb.mxu2 %v628_v20 }
  0x4e   : > { %428 = vmatpush.msrb.mxu1 %v629_v21  ;;  %679 = vmatpush.msrb.mxu3 %v629_v21 }
  0x4f   : > { %406 = vmatpush.msrb.mxu0 %v626_v22  ;;  %664 = vmatpush.msrb.mxu2 %v626_v22 }
  0x50   : > { %429 = vmatpush.msrb.mxu1 %v627_v23  ;;  %680 = vmatpush.msrb.mxu3 %v627_v23 }
  0x51   : > { %407 = vmatpush.msrb.mxu0 %v624_v24  ;;  %665 = vmatpush.msrb.mxu2 %v624_v24 }
  0x52   : > { %430 = vmatpush.msrb.mxu1 %v625_v25  ;;  %681 = vmatpush.msrb.mxu3 %v625_v25 }
  0x53   : > { %288 = vmatmul.f32.gmra.mxu0 %v235_v26  ;;  %311 = vmatmul.f32.gmra.mxu1 %v235_v26 }
  0x54   : > { %334 = vmatmul.f32.gmra.mxu2 %v201_v27  ;;  %357 = vmatmul.f32.gmra.mxu3 %v201_v27 }
  0x55   : > { %408 = vmatpush.msrb.mxu0 %v622_v28  ;;  %666 = vmatpush.msrb.mxu2 %v622_v28 }
  0x56   : > { %431 = vmatpush.msrb.mxu1 %v623_v29  ;;  %682 = vmatpush.msrb.mxu3 %v623_v29 }
  0x57   : > { %409 = vmatpush.msrb.mxu0 %v620_v30  ;;  %667 = vmatpush.msrb.mxu2 %v620_v30 }
  0x58   : > { %432 = vmatpush.msrb.mxu1 %v621_v31  ;;  %683 = vmatpush.msrb.mxu3 %v621_v31 }
  0x59   : > { %410 = vmatpush.msrb.mxu0 %v618_v32  ;;  %668 = vmatpush.msrb.mxu2 %v618_v32 }
  0x5a   : > { %433 = vmatpush.msrb.mxu1 %v619_v33  ;;  %684 = vmatpush.msrb.mxu3 %v619_v33 }
  0x5b   : > { %411 = vmatpush.msrb.mxu0 %v616_v34  ;;  %669 = vmatpush.msrb.mxu2 %v616_v34 }
  0x5c   : > { %434 = vmatpush.msrb.mxu1 %v617_v35  ;;  %685 = vmatpush.msrb.mxu3 %v617_v35 }
  0x5d   : > { %412 = vmatmul.f32.vlgmr.msrb.gmra.mxu0 %v361_v36  ;;  %415 = vmatmul.f32.vlgmr.msrb.gmra.mxu2 %v362_v37 }
  0x5e   : > { %435 = vmatmul.f32.vlgmr.msrb.gmra.mxu1 %v361_v36  ;;  %438 = vmatmul.f32.vlgmr.msrb.gmra.mxu3 %v362_v37 }
  0xc6   : > { %v286_v38 = vpop.f32.mrf.mxu0  ;;  %v309_v39 = vpop.f32.mrf.mxu1 }
  0xcd   : > { %v332_v40 = vpop.f32.mrf.mxu2  ;;  %v355_v41 = vpop.f32.mrf.mxu3 }
  0xce   : > { %v333_v47 = vadd.f32 %v332_v40, %v286_v38  ;;  %v356_v49 = vadd.f32 %v355_v41, %v309_v39 }
  0xd0   : > { %v289_v42 = vpop.f32.mrf.mxu0  ;;  %v312_v43 = vpop.f32.mrf.mxu1 }
  0xd7   : > { %v335_v45 = vpop.f32.mrf.mxu2  ;;  %v358_v46 = vpop.f32.mrf.mxu3 }
  0xd8   : > { %v336_v57 = vadd.f32 %v335_v45, %v289_v42  ;;  %v359_v59 = vadd.f32 %v358_v46, %v312_v43 }
  0xda   : > { %v413_v50 = vpop.f32.mrf.mxu0 }
  0xdb   : > { %v442_v52 = vadd.f32 %v413_v50, %v333_v47  ;;  %v436_v53 = vpop.f32.mrf.mxu1 }
  0xdc   : > { %v443_v54 = vadd.f32 %v436_v53, %v356_v49 }
  0xdd   : > { %v452_v55 = vadd.f32 %v448_v48, %v442_v52 }
  0xde   : > { %v453_v56 = vadd.f32 %v449_v51, %v443_v54 }
  0xdf   : > { %v456_v58 = vmax.f32 %v452_v55, 0.0 }
  0xe0   : > { %v457_v60 = vmax.f32 %v453_v56, 0.0  ;;  %v416_v61 = vpop.f32.mrf.mxu2 }
  0xe1   : > { %460 = vst [vmem:[%s188_s25] sm:$0xff] %v456_v58  ;;  %v444_v62 = vadd.f32 %v416_v61, %v336_v57  ;;  %v439_v63 = vpop.f32.mrf.mxu3 }
  0xe2   : > { %461 = vst [vmem:[%s188_s25 + $0x8] sm:$0xff] %v457_v60  ;;  %v445_v0 = vadd.f32 %v439_v63, %v359_v59 }
  0xe3   : > { %v454_v1 = vadd.f32 %v448_v48, %v444_v62 }
  0xe4   : > { %v455_v2 = vadd.f32 %v449_v51, %v445_v0  ;;  %470 = sbr.rel (!%p866_p5) target bundleno = 241 (0xf1), region = 36 }
  0xe5   : > { %v458_v3 = vmax.f32 %v454_v1, 0.0 }
  0xe6   : > { %v459_v4 = vmax.f32 %v455_v2, 0.0 }
  0xe7   : > { %462 = vst [vmem:[%s188_s25 + $0x10] sm:$0xff] %v458_v3 }
  0xe8   : > { %463 = vst [vmem:[%s188_s25 + $0x18] sm:$0xff] %v459_v4  ;;  %v488_v5 = vld [vmem:[%s188_s25] sm:$0xff] (%p866_p5) }
  0xe9   : > { %v490_v6 = vld [vmem:[%s188_s25 + $0x8] sm:$0xff]  ;;  %489 = vst [vmem:[%s475_s5] sm:$0xff] %v488_v5 }
  0xea   : > { %491 = vst [vmem:[%s475_s5 + $0x8] sm:$0xff] %v490_v6 }
  0xee   : > { %v492_v7 = vld [vmem:[%s188_s25 + $0x10] sm:$0xff] }
  0xef   : > { %v494_v8 = vld [vmem:[%s188_s25 + $0x18] sm:$0xff]  ;;  %493 = vst [vmem:[%s475_s5 + $0x20] sm:$0xff] %v492_v7 }
  0xf0   : > { %495 = vst [vmem:[%s475_s5 + $0x28] sm:$0xff] %v494_v8 }
  0xf1 PF: > { %s13_s18 = sadd.s32 1, %s798_s18   ;;  %s1032_s12 = smov %s778_s13 }
  0xf2   : > { %p10_p11 = scmp.ge.s32.totalorder %s13_s18, 6   ;;  %s1033_s13 = smov %s877_s27 }
  0xf3   : > { %s1034_s14 = smov %s790_s16  ;;  %s1035_s15 = smov %s794_s17 }
  0xf4   : > { %s1036_s16 = smov %s1039_s19  ;;  %s1037_s17 = smov %s1043_s20 }
  0xf5   :  { %12 = sbr.rel (!%p10_p11) target bundleno = 4 (0x4), region = 90 }

// kernel: _lambda_.5
= control target key start
LH: loop header
LB: loop body
LE: loop exit
PB: predicated region body
PF: predicated region fallthrough
CT: control target
= control target key end

     0   :  { %s1183_s12 = smov 0   ;;  %s1185_s13 = smov 0   ;;  %s1921_s0 = inlined_call_operand.vmem [shape: f32[2,34,256], index: 0, kind: input, shape index: {}]   ;;  %s1922_s1 = inlined_call_operand.vmem [shape: f32[1,3,256,256], index: 1, kind: input, shape index: {}]   ;;  %s1923_s2 = inlined_call_operand.vmem [shape: f32[1,256], index: 2, kind: input, shape index: {}]   ;;  %s1924_s3 = inlined_call_operand.vmem [shape: f32[2,32,256], index: 3, kind: output, shape index: {}]  }
   0x1   :  { %s1187_s14 = smov 0  }
   0x2 LB: > { %s25_s15 = sadd.s32 1, %s1157_s13  ;;  %p979_p0 = scmp.ge.s32.totalorder %s1161_s14, 1  ;;  %s1161_s14 = sphi %s1187_s14, %s13_s14   ;;  %s1157_s13 = sphi %s1185_s13, %s1926_s13   ;;  %s1153_s12 = sphi %s1183_s12, %s1925_s12  }
   0x3   : > { %p27_p1 = scmp.ge.s32.totalorder %s25_s15, 2  ;;  %p161_p2 = scmp.lt.s32.totalorder %s1161_s14, 3 }
   0x5   : > { %s1928_s15 = smov (%p27_p1, %s25_s15), 0  ;;  %p162_p3 = pnand %p979_p0, %p161_p2 }
   0x6   : > { %p194_p4 = scmp.lt.s32.totalorder (!%p162_p3), %s1153_s12, 1 }
   0x7   : > { %165 = sbr.rel (%p162_p3) target bundleno = 291 (0x123), region = 32 }
   0xc   : > { %v1013_v0 = vld [vmem:[%s1922_s1 + $0x2f0] sm:$0xff]  ;;  %v1014_v2 = vld [vmem:[%s1922_s1 + $0x2f8] sm:$0xff]  ;;  %v1011_v4 = vld [vmem:[%s1922_s1 + $0x2e0] sm:$0xff]  ;;  %s1930_s12 = smov (!%p194_p4, %s1153_s12), 1  ;;  %vm365_vm0 = vcmask 1046528   ;;  %vm697_vm1 = vcmask 1045504  }
   0xd   : > { %v1045_v1 = vld [vmem:[%s1922_s1 + $0x3f0] sm:$0xff]  ;;  %392 = vmatpush.msra.mxu0 %v1013_v0  ;;  %v1046_v3 = vld [vmem:[%s1922_s1 + $0x3f8] sm:$0xff]  ;;  %v1043_v5 = vld [vmem:[%s1922_s1 + $0x3e0] sm:$0xff]  ;;  %450 = vmatpush.msra.mxu2 %v1014_v2  ;;  %s1114_s19 = smul.u32 80, %s1930_s12  ;;  %s1113_s27 = sshll.u32 %s1930_s12, 6 }
   0xe   : > { %421 = vmatpush.msra.mxu1 %v1045_v1  ;;  %479 = vmatpush.msra.mxu3 %v1046_v3  ;;  %v1012_v6 = vld [vmem:[%s1922_s1 + $0x2e8] sm:$0xff]  ;;  %v1009_v8 = vld [vmem:[%s1922_s1 + $0x2d0] sm:$0xff]  ;;  %v1010_v10 = vld [vmem:[%s1922_s1 + $0x2d8] sm:$0xff]  ;;  %s1889_s30 = scalar_lea.vmem %s1924_s3, %s1113_s27 }
   0xf   : > { %v1044_v7 = vld [vmem:[%s1922_s1 + $0x3e8] sm:$0xff]  ;;  %393 = vmatpush.msra.mxu0 %v1011_v4  ;;  %v1041_v9 = vld [vmem:[%s1922_s1 + $0x3d0] sm:$0xff]  ;;  %v1042_v11 = vld [vmem:[%s1922_s1 + $0x3d8] sm:$0xff]  ;;  %451 = vmatpush.msra.mxu2 %v1012_v6  ;;  %s1345_s11 = scalar_lea.vmem %s1921_s0, %s1114_s19 }
  0x10   : > { %422 = vmatpush.msra.mxu1 %v1043_v5  ;;  %480 = vmatpush.msra.mxu3 %v1044_v7  ;;  %v1007_v12 = vld [vmem:[%s1922_s1 + $0x2c0] sm:$0xff]  ;;  %v1008_v14 = vld [vmem:[%s1922_s1 + $0x2c8] sm:$0xff]  ;;  %v1005_v16 = vld [vmem:[%s1922_s1 + $0x2b0] sm:$0xff] }
  0x11   : > { %v1039_v13 = vld [vmem:[%s1922_s1 + $0x3c0] sm:$0xff]  ;;  %394 = vmatpush.msra.mxu0 %v1009_v8  ;;  %v1040_v15 = vld [vmem:[%s1922_s1 + $0x3c8] sm:$0xff]  ;;  %452 = vmatpush.msra.mxu2 %v1010_v10  ;;  %v1037_v17 = vld [vmem:[%s1922_s1 + $0x3b0] sm:$0xff] }
  0x12   : > { %423 = vmatpush.msra.mxu1 %v1041_v9  ;;  %481 = vmatpush.msra.mxu3 %v1042_v11  ;;  %v1006_v18 = vld [vmem:[%s1922_s1 + $0x2b8] sm:$0xff]  ;;  %v1003_v20 = vld [vmem:[%s1922_s1 + $0x2a0] sm:$0xff]  ;;  %v1004_v22 = vld [vmem:[%s1922_s1 + $0x2a8] sm:$0xff] }
  0x13   : > { %395 = vmatpush.msra.mxu0 %v1007_v12  ;;  %v1038_v19 = vld [vmem:[%s1922_s1 + $0x3b8] sm:$0xff]  ;;  %453 = vmatpush.msra.mxu2 %v1008_v14  ;;  %v1035_v21 = vld [vmem:[%s1922_s1 + $0x3a0] sm:$0xff]  ;;  %v1036_v23 = vld [vmem:[%s1922_s1 + $0x3a8] sm:$0xff] }
  0x14   : > { %424 = vmatpush.msra.mxu1 %v1039_v13  ;;  %482 = vmatpush.msra.mxu3 %v1040_v15  ;;  %v1001_v24 = vld [vmem:[%s1922_s1 + $0x290] sm:$0xff]  ;;  %v1002_v26 = vld [vmem:[%s1922_s1 + $0x298] sm:$0xff]  ;;  %v999_v28 = vld [vmem:[%s1922_s1 + $0x280] sm:$0xff] }
  0x15   : > { %396 = vmatpush.msra.mxu0 %v1005_v16  ;;  %454 = vmatpush.msra.mxu2 %v1006_v18  ;;  %v1033_v25 = vld [vmem:[%s1922_s1 + $0x390] sm:$0xff]  ;;  %v1034_v27 = vld [vmem:[%s1922_s1 + $0x398] sm:$0xff]  ;;  %v1031_v29 = vld [vmem:[%s1922_s1 + $0x380] sm:$0xff] }
  0x16   : > { %425 = vmatpush.msra.mxu1 %v1037_v17  ;;  %483 = vmatpush.msra.mxu3 %v1038_v19  ;;  %v1000_v30 = vld [vmem:[%s1922_s1 + $0x288] sm:$0xff]  ;;  %v997_v32 = vld [vmem:[%s1922_s1 + $0x270] sm:$0xff]  ;;  %v998_v34 = vld [vmem:[%s1922_s1 + $0x278] sm:$0xff] }
  0x17   : > { %397 = vmatpush.msra.mxu0 %v1003_v20  ;;  %455 = vmatpush.msra.mxu2 %v1004_v22  ;;  %v1032_v31 = vld [vmem:[%s1922_s1 + $0x388] sm:$0xff]  ;;  %v1029_v33 = vld [vmem:[%s1922_s1 + $0x370] sm:$0xff]  ;;  %v1030_v35 = vld [vmem:[%s1922_s1 + $0x378] sm:$0xff] }
  0x18   : > { %426 = vmatpush.msra.mxu1 %v1035_v21  ;;  %484 = vmatpush.msra.mxu3 %v1036_v23  ;;  %v995_v36 = vld [vmem:[%s1922_s1 + $0x260] sm:$0xff]  ;;  %v996_v38 = vld [vmem:[%s1922_s1 + $0x268] sm:$0xff]  ;;  %v993_v40 = vld [vmem:[%s1922_s1 + $0x250] sm:$0xff] }
  0x19   : > { %398 = vmatpush.msra.mxu0 %v1001_v24  ;;  %456 = vmatpush.msra.mxu2 %v1002_v26  ;;  %v1027_v37 = vld [vmem:[%s1922_s1 + $0x360] sm:$0xff]  ;;  %v1028_v39 = vld [vmem:[%s1922_s1 + $0x368] sm:$0xff]  ;;  %v1025_v41 = vld [vmem:[%s1922_s1 + $0x350] sm:$0xff] }
  0x1a   : > { %427 = vmatpush.msra.mxu1 %v1033_v25  ;;  %485 = vmatpush.msra.mxu3 %v1034_v27  ;;  %v994_v42 = vld [vmem:[%s1922_s1 + $0x258] sm:$0xff]  ;;  %v991_v44 = vld [vmem:[%s1922_s1 + $0x240] sm:$0xff]  ;;  %v992_v46 = vld [vmem:[%s1922_s1 + $0x248] sm:$0xff] }
  0x1b   : > { %399 = vmatpush.msra.mxu0 %v999_v28  ;;  %457 = vmatpush.msra.mxu2 %v1000_v30  ;;  %v1026_v43 = vld [vmem:[%s1922_s1 + $0x358] sm:$0xff]  ;;  %v1023_v45 = vld [vmem:[%s1922_s1 + $0x340] sm:$0xff]  ;;  %v1024_v47 = vld [vmem:[%s1922_s1 + $0x348] sm:$0xff] }
  0x1c   : > { %428 = vmatpush.msra.mxu1 %v1031_v29  ;;  %486 = vmatpush.msra.mxu3 %v1032_v31  ;;  %v989_v48 = vld [vmem:[%s1922_s1 + $0x230] sm:$0xff]  ;;  %v990_v50 = vld [vmem:[%s1922_s1 + $0x238] sm:$0xff]  ;;  %v286_v53 = vld [vmem:[%s1345_s11] sm:$0xfe] }
  0x1d   : > { %400 = vmatpush.msra.mxu0 %v997_v32  ;;  %458 = vmatpush.msra.mxu2 %v998_v34  ;;  %v1021_v49 = vld [vmem:[%s1922_s1 + $0x330] sm:$0xff]  ;;  %v1022_v51 = vld [vmem:[%s1922_s1 + $0x338] sm:$0xff]  ;;  %v287_v55 = vld [vmem:[%s1345_s11 + $0x8] sm:$0xfe]  ;;  %v366_v62 = vrot.slane %v286_v53, 1 }
  0x1e   : > { %429 = vmatpush.msra.mxu1 %v1029_v33  ;;  %487 = vmatpush.msra.mxu3 %v1030_v35  ;;  %v1372_v52 = vld [vmem:[%s1345_s11 + $0x10] sm:$0xff]  ;;  %v1376_v54 = vld [vmem:[%s1345_s11 + $0x18] sm:$0xff]  ;;  %v987_v56 = vld [vmem:[%s1922_s1 + $0x220] sm:$0xff]  ;;  %v369_v0 = vrot.slane %v287_v55, 1 }
  0x1f   : > { %401 = vmatpush.msra.mxu0 %v995_v36  ;;  %459 = vmatpush.msra.mxu2 %v996_v38  ;;  %v1019_v57 = vld [vmem:[%s1922_s1 + $0x320] sm:$0xff]  ;;  %v988_v58 = vld [vmem:[%s1922_s1 + $0x228] sm:$0xff]  ;;  %v985_v60 = vld [vmem:[%s1922_s1 + $0x210] sm:$0xff]  ;;  %v367_v63 = vrot.slane %v1372_v52, 1  ;;  %v370_v1 = vrot.slane %v1376_v54, 1 }
  0x20   : > { %430 = vmatpush.msra.mxu1 %v1027_v37  ;;  %488 = vmatpush.msra.mxu3 %v1028_v39  ;;  %v1020_v59 = vld [vmem:[%s1922_s1 + $0x328] sm:$0xff]  ;;  %v1017_v61 = vld [vmem:[%s1922_s1 + $0x310] sm:$0xff]  ;;  %v986_v2 = vld [vmem:[%s1922_s1 + $0x218] sm:$0xff] }
  0x21   : > { %402 = vmatpush.msra.mxu0 %v993_v40  ;;  %460 = vmatpush.msra.mxu2 %v994_v42  ;;  %v1018_v3 = vld [vmem:[%s1922_s1 + $0x318] sm:$0xff]  ;;  %v983_v4 = vld [vmem:[%s1922_s1 + $0x200] sm:$0xff]  ;;  %v984_v6 = vld [vmem:[%s1922_s1 + $0x208] sm:$0xff]  ;;  %v368_v8 = vsel %vm365_vm0, %v366_v62, %v367_v63  ;;  %v371_v9 = vsel %vm365_vm0, %v369_v0, %v370_v1 }
  0x22   : > { %431 = vmatpush.msra.mxu1 %v1025_v41  ;;  %489 = vmatpush.msra.mxu3 %v1026_v43  ;;  %v1015_v5 = vld [vmem:[%s1922_s1 + $0x300] sm:$0xff]  ;;  %v1016_v7 = vld [vmem:[%s1922_s1 + $0x308] sm:$0xff]  ;;  %v253_v10 = vld [vmem:[%s1922_s1 + $0xf8] sm:$0xff] }
  0x23   : > { %403 = vmatpush.msra.mxu0 %v991_v44  ;;  %461 = vmatpush.msra.mxu2 %v992_v46  ;;  %v285_v11 = vld [vmem:[%s1922_s1 + $0x1f8] sm:$0xff]  ;;  %v252_v12 = vld [vmem:[%s1922_s1 + $0xf0] sm:$0xff]  ;;  %v1432_v14 = vld [vmem:[%s1345_s11 + $0x20] sm:$0xff] }
  0x24   : > { %432 = vmatpush.msra.mxu1 %v1023_v45  ;;  %490 = vmatpush.msra.mxu3 %v1024_v47  ;;  %v284_v13 = vld [vmem:[%s1922_s1 + $0x1f0] sm:$0xff]  ;;  %v1435_v15 = vld [vmem:[%s1345_s11 + $0x28] sm:$0xff]  ;;  %v250_v18 = vld [vmem:[%s1922_s1 + $0xe0] sm:$0xff]  ;;  %v372_v22 = vrot.slane %v1432_v14, 1 }
  0x25   : > { %404 = vmatpush.msra.mxu0 %v989_v48  ;;  %462 = vmatpush.msra.mxu2 %v990_v50  ;;  %v251_v16 = vld [vmem:[%s1922_s1 + $0xe8] sm:$0xff]  ;;  %v282_v19 = vld [vmem:[%s1922_s1 + $0x1e0] sm:$0xff]  ;;  %v249_v20 = vld [vmem:[%s1922_s1 + $0xd8] sm:$0xff]  ;;  %v374_v23 = vrot.slane %v1435_v15, 1 }
  0x26   : > { %433 = vmatpush.msra.mxu1 %v1021_v49  ;;  %491 = vmatpush.msra.mxu3 %v1022_v51  ;;  %v283_v17 = vld [vmem:[%s1922_s1 + $0x1e8] sm:$0xff]  ;;  %v281_v21 = vld [vmem:[%s1922_s1 + $0x1d8] sm:$0xff]  ;;  %v248_v24 = vld [vmem:[%s1922_s1 + $0xd0] sm:$0xff]  ;;  %v373_v30 = vsel %vm365_vm0, %v367_v63, %v372_v22 }
  0x27   : > { %405 = vmatpush.msra.mxu0 %v987_v56  ;;  %463 = vmatpush.msra.mxu2 %v988_v58  ;;  %v280_v25 = vld [vmem:[%s1922_s1 + $0x1d0] sm:$0xff]  ;;  %v247_v26 = vld [vmem:[%s1922_s1 + $0xc8] sm:$0xff]  ;;  %v246_v28 = vld [vmem:[%s1922_s1 + $0xc0] sm:$0xff]  ;;  %v375_v31 = vsel %vm365_vm0, %v370_v1, %v374_v23 }
  0x28   : > { %434 = vmatpush.msra.mxu1 %v1019_v57  ;;  %492 = vmatpush.msra.mxu3 %v1020_v59  ;;  %v279_v27 = vld [vmem:[%s1922_s1 + $0x1c8] sm:$0xff]  ;;  %v278_v29 = vld [vmem:[%s1922_s1 + $0x1c0] sm:$0xff]  ;;  %v245_v32 = vld [vmem:[%s1922_s1 + $0xb8] sm:$0xff] }
  0x29   : > { %406 = vmatpush.msra.mxu0 %v985_v60  ;;  %464 = vmatpush.msra.mxu2 %v986_v2  ;;  %v277_v33 = vld [vmem:[%s1922_s1 + $0x1b8] sm:$0xff]  ;;  %v244_v34 = vld [vmem:[%s1922_s1 + $0xb0] sm:$0xff]  ;;  %v243_v38 = vld [vmem:[%s1922_s1 + $0xa8] sm:$0xff] }
  0x2a   : > { %435 = vmatpush.msra.mxu1 %v1017_v61  ;;  %493 = vmatpush.msra.mxu3 %v1018_v3  ;;  %v276_v35 = vld [vmem:[%s1922_s1 + $0x1b0] sm:$0xff]  ;;  %v1493_v37 = vld [vmem:[%s1345_s11 + $0x38] sm:$0xff]  ;;  %v275_v39 = vld [vmem:[%s1922_s1 + $0x1a8] sm:$0xff] }
  0x2b   : > { %407 = vmatpush.msra.mxu0 %v983_v4  ;;  %465 = vmatpush.msra.mxu2 %v984_v6  ;;  %v1490_v36 = vld [vmem:[%s1345_s11 + $0x30] sm:$0xff]  ;;  %v242_v40 = vld [vmem:[%s1922_s1 + $0xa0] sm:$0xff]  ;;  %v241_v42 = vld [vmem:[%s1922_s1 + $0x98] sm:$0xff]  ;;  %v378_v45 = vrot.slane %v1493_v37, 1 }
  0x2c   : > { %436 = vmatpush.msra.mxu1 %v1015_v5  ;;  %494 = vmatpush.msra.mxu3 %v1016_v7  ;;  %v274_v41 = vld [vmem:[%s1922_s1 + $0x1a0] sm:$0xff]  ;;  %v273_v43 = vld [vmem:[%s1922_s1 + $0x198] sm:$0xff]  ;;  %v376_v44 = vrot.slane %v1490_v36, 1  ;;  %v240_v46 = vld [vmem:[%s1922_s1 + $0x90] sm:$0xff] }
  0x2d   : > { %408 = vmatmul.f32.vlgmr.msra.gmra.mxu0 %v368_v8  ;;  %437 = vmatmul.f32.vlgmr.msra.gmra.mxu1 %v371_v9  ;;  %v272_v47 = vld [vmem:[%s1922_s1 + $0x190] sm:$0xff]  ;;  %v239_v48 = vld [vmem:[%s1922_s1 + $0x88] sm:$0xff]  ;;  %v238_v50 = vld [vmem:[%s1922_s1 + $0x80] sm:$0xff]  ;;  %v379_v55 = vsel %vm365_vm0, %v374_v23, %v378_v45 }
  0x2e   : > { %466 = vmatmul.f32.vlgmr.msra.gmra.mxu2 %v368_v8  ;;  %495 = vmatmul.f32.vlgmr.msra.gmra.mxu3 %v371_v9  ;;  %v271_v49 = vld [vmem:[%s1922_s1 + $0x188] sm:$0xff]  ;;  %v270_v51 = vld [vmem:[%s1922_s1 + $0x180] sm:$0xff]  ;;  %v377_v53 = vsel %vm365_vm0, %v372_v22, %v376_v44  ;;  %v237_v56 = vld [vmem:[%s1922_s1 + $0x78] sm:$0xff] }
  0x2f   : > { %566 = vmatpush.msrb.mxu2 %v253_v10  ;;  %595 = vmatpush.msrb.mxu3 %v285_v11  ;;  %v269_v57 = vld [vmem:[%s1922_s1 + $0x178] sm:$0xff]  ;;  %v236_v58 = vld [vmem:[%s1922_s1 + $0x70] sm:$0xff]  ;;  %v288_v60 = vld [vmem:[%s1345_s11 + $0x40] sm:$0x1] }
  0x30   : > { %508 = vmatpush.msrb.mxu0 %v252_v12  ;;  %537 = vmatpush.msrb.mxu1 %v284_v13  ;;  %v268_v59 = vld [vmem:[%s1922_s1 + $0x170] sm:$0xff]  ;;  %v289_v61 = vld [vmem:[%s1345_s11 + $0x48] sm:$0x1]  ;;  %v234_v0 = vld [vmem:[%s1922_s1 + $0x60] sm:$0xff]  ;;  %v380_v4 = vrot.slane %v288_v60, 1 }
  0x31   : > { %567 = vmatpush.msrb.mxu2 %v251_v16  ;;  %596 = vmatpush.msrb.mxu3 %v283_v17  ;;  %v235_v62 = vld [vmem:[%s1922_s1 + $0x68] sm:$0xff]  ;;  %v266_v1 = vld [vmem:[%s1922_s1 + $0x160] sm:$0xff]  ;;  %v233_v2 = vld [vmem:[%s1922_s1 + $0x58] sm:$0xff]  ;;  %v382_v5 = vrot.slane %v289_v61, 1 }
  0x32   : > { %509 = vmatpush.msrb.mxu0 %v250_v18  ;;  %538 = vmatpush.msrb.mxu1 %v282_v19  ;;  %v267_v63 = vld [vmem:[%s1922_s1 + $0x168] sm:$0xff]  ;;  %v265_v3 = vld [vmem:[%s1922_s1 + $0x158] sm:$0xff]  ;;  %v232_v6 = vld [vmem:[%s1922_s1 + $0x50] sm:$0xff]  ;;  %v381_v12 = vsel %vm365_vm0, %v376_v44, %v380_v4 }
  0x33   : > { %568 = vmatpush.msrb.mxu2 %v249_v20  ;;  %597 = vmatpush.msrb.mxu3 %v281_v21  ;;  %v264_v7 = vld [vmem:[%s1922_s1 + $0x150] sm:$0xff]  ;;  %v231_v8 = vld [vmem:[%s1922_s1 + $0x48] sm:$0xff]  ;;  %v230_v10 = vld [vmem:[%s1922_s1 + $0x40] sm:$0xff]  ;;  %v383_v13 = vsel %vm365_vm0, %v378_v45, %v382_v5 }
  0x34   : > { %510 = vmatpush.msrb.mxu0 %v248_v24  ;;  %539 = vmatpush.msrb.mxu1 %v280_v25  ;;  %v263_v9 = vld [vmem:[%s1922_s1 + $0x148] sm:$0xff]  ;;  %v262_v11 = vld [vmem:[%s1922_s1 + $0x140] sm:$0xff]  ;;  %v229_v16 = vld [vmem:[%s1922_s1 + $0x38] sm:$0xff] }
  0x35   : > { %569 = vmatpush.msrb.mxu2 %v247_v26  ;;  %598 = vmatpush.msrb.mxu3 %v279_v27  ;;  %v261_v17 = vld [vmem:[%s1922_s1 + $0x138] sm:$0xff]  ;;  %v228_v18 = vld [vmem:[%s1922_s1 + $0x30] sm:$0xff]  ;;  %v227_v20 = vld [vmem:[%s1922_s1 + $0x28] sm:$0xff] }
  0x36   : > { %511 = vmatpush.msrb.mxu0 %v246_v28  ;;  %540 = vmatpush.msrb.mxu1 %v278_v29  ;;  %v260_v19 = vld [vmem:[%s1922_s1 + $0x130] sm:$0xff]  ;;  %v259_v21 = vld [vmem:[%s1922_s1 + $0x128] sm:$0xff]  ;;  %v226_v22 = vld [vmem:[%s1922_s1 + $0x20] sm:$0xff] }
  0x37   : > { %411 = vmatmul.f32.gmra.mxu0 %v373_v30  ;;  %440 = vmatmul.f32.gmra.mxu1 %v375_v31  ;;  %v258_v23 = vld [vmem:[%s1922_s1 + $0x120] sm:$0xff]  ;;  %v225_v24 = vld [vmem:[%s1922_s1 + $0x18] sm:$0xff]  ;;  %v224_v26 = vld [vmem:[%s1922_s1 + $0x10] sm:$0xff] }
  0x38   : > { %469 = vmatmul.f32.gmra.mxu2 %v373_v30  ;;  %498 = vmatmul.f32.gmra.mxu3 %v375_v31  ;;  %v257_v25 = vld [vmem:[%s1922_s1 + $0x118] sm:$0xff]  ;;  %v256_v27 = vld [vmem:[%s1922_s1 + $0x110] sm:$0xff]  ;;  %v223_v28 = vld [vmem:[%s1922_s1 + $0x8] sm:$0xff] }
  0x39   : > { %570 = vmatpush.msrb.mxu2 %v245_v32  ;;  %599 = vmatpush.msrb.mxu3 %v277_v33  ;;  %v255_v29 = vld [vmem:[%s1922_s1 + $0x108] sm:$0xff]  ;;  %v222_v30 = vld [vmem:[%s1922_s1] sm:$0xff]  ;;  %v1074_v44 = vld [vmem:[%s1922_s1 + $0x4d8] sm:$0xff] }
  0x3a   : > { %512 = vmatpush.msrb.mxu0 %v244_v34  ;;  %541 = vmatpush.msrb.mxu1 %v276_v35  ;;  %v254_v31 = vld [vmem:[%s1922_s1 + $0x100] sm:$0xff]  ;;  %v215_v33 = vld [vmem:[%s1345_s11 + $0x8] sm:$0xff]  ;;  %v1078_v34 = vld [vmem:[%s1922_s1 + $0x4f8] sm:$0xff] }
  0x3b   : > { %571 = vmatpush.msrb.mxu2 %v243_v38  ;;  %600 = vmatpush.msrb.mxu3 %v275_v39  ;;  %v214_v32 = vld [vmem:[%s1345_s11] sm:$0xff]  ;;  %v1110_v35 = vld [vmem:[%s1922_s1 + $0x5f8] sm:$0xff]  ;;  %v1077_v38 = vld [vmem:[%s1922_s1 + $0x4f0] sm:$0xff] }
  0x3c   : > { %513 = vmatpush.msrb.mxu0 %v242_v40  ;;  %542 = vmatpush.msrb.mxu1 %v274_v41  ;;  %v1109_v39 = vld [vmem:[%s1922_s1 + $0x5f0] sm:$0xff]  ;;  %v1076_v40 = vld [vmem:[%s1922_s1 + $0x4e8] sm:$0xff]  ;;  %v1106_v45 = vld [vmem:[%s1922_s1 + $0x5d8] sm:$0xff] }
  0x3d   : > { %572 = vmatpush.msrb.mxu2 %v241_v42  ;;  %601 = vmatpush.msrb.mxu3 %v273_v43  ;;  %v1108_v41 = vld [vmem:[%s1922_s1 + $0x5e8] sm:$0xff]  ;;  %v1075_v42 = vld [vmem:[%s1922_s1 + $0x4e0] sm:$0xff] }
  0x3e   : > { %514 = vmatpush.msrb.mxu0 %v240_v46  ;;  %543 = vmatpush.msrb.mxu1 %v272_v47  ;;  %v1107_v43 = vld [vmem:[%s1922_s1 + $0x5e0] sm:$0xff]  ;;  %v1073_v46 = vld [vmem:[%s1922_s1 + $0x4d0] sm:$0xff] }
  0x3f   : > { %573 = vmatpush.msrb.mxu2 %v239_v48  ;;  %602 = vmatpush.msrb.mxu3 %v271_v49  ;;  %v1105_v47 = vld [vmem:[%s1922_s1 + $0x5d0] sm:$0xff]  ;;  %v1072_v48 = vld [vmem:[%s1922_s1 + $0x4c8] sm:$0xff]  ;;  %v1067_v60 = vld [vmem:[%s1922_s1 + $0x4a0] sm:$0xff] }
  0x40   : > { %515 = vmatpush.msrb.mxu0 %v238_v50  ;;  %544 = vmatpush.msrb.mxu1 %v270_v51  ;;  %v1104_v49 = vld [vmem:[%s1922_s1 + $0x5c8] sm:$0xff]  ;;  %v1071_v50 = vld [vmem:[%s1922_s1 + $0x4c0] sm:$0xff] }
  0x41   : > { %414 = vmatmul.f32.gmra.mxu0 %v377_v53  ;;  %443 = vmatmul.f32.gmra.mxu1 %v379_v55  ;;  %v1103_v51 = vld [vmem:[%s1922_s1 + $0x5c0] sm:$0xff] }
  0x42   : > { %472 = vmatmul.f32.gmra.mxu2 %v377_v53  ;;  %501 = vmatmul.f32.gmra.mxu3 %v379_v55  ;;  %v1070_v53 = vld [vmem:[%s1922_s1 + $0x4b8] sm:$0xff]  ;;  %v1099_v61 = vld [vmem:[%s1922_s1 + $0x5a0] sm:$0xff] }
  0x43   : > { %574 = vmatpush.msrb.mxu2 %v237_v56  ;;  %603 = vmatpush.msrb.mxu3 %v269_v57  ;;  %v1102_v55 = vld [vmem:[%s1922_s1 + $0x5b8] sm:$0xff]  ;;  %v1069_v56 = vld [vmem:[%s1922_s1 + $0x4b0] sm:$0xff]  ;;  %v1063_v4 = vld [vmem:[%s1922_s1 + $0x480] sm:$0xff] }
  0x44   : > { %516 = vmatpush.msrb.mxu0 %v236_v58  ;;  %545 = vmatpush.msrb.mxu1 %v268_v59  ;;  %v1101_v57 = vld [vmem:[%s1922_s1 + $0x5b0] sm:$0xff]  ;;  %v1068_v58 = vld [vmem:[%s1922_s1 + $0x4a8] sm:$0xff]  ;;  %v1095_v5 = vld [vmem:[%s1922_s1 + $0x580] sm:$0xff] }
  0x45   : > { %575 = vmatpush.msrb.mxu2 %v235_v62  ;;  %604 = vmatpush.msrb.mxu3 %v267_v63  ;;  %v1100_v59 = vld [vmem:[%s1922_s1 + $0x5a8] sm:$0xff]  ;;  %v1066_v62 = vld [vmem:[%s1922_s1 + $0x498] sm:$0xff] }
  0x46   : > { %517 = vmatpush.msrb.mxu0 %v234_v0  ;;  %546 = vmatpush.msrb.mxu1 %v266_v1  ;;  %v1098_v63 = vld [vmem:[%s1922_s1 + $0x598] sm:$0xff]  ;;  %v1065_v0 = vld [vmem:[%s1922_s1 + $0x490] sm:$0xff] }
  0x47   : > { %576 = vmatpush.msrb.mxu2 %v233_v2  ;;  %605 = vmatpush.msrb.mxu3 %v265_v3  ;;  %v1097_v1 = vld [vmem:[%s1922_s1 + $0x590] sm:$0xff]  ;;  %v1064_v2 = vld [vmem:[%s1922_s1 + $0x488] sm:$0xff] }
  0x48   : > { %518 = vmatpush.msrb.mxu0 %v232_v6  ;;  %547 = vmatpush.msrb.mxu1 %v264_v7  ;;  %v1096_v3 = vld [vmem:[%s1922_s1 + $0x588] sm:$0xff]  ;;  %v1062_v6 = vld [vmem:[%s1922_s1 + $0x478] sm:$0xff] }
  0x49   : > { %577 = vmatpush.msrb.mxu2 %v231_v8  ;;  %606 = vmatpush.msrb.mxu3 %v263_v9  ;;  %v1094_v7 = vld [vmem:[%s1922_s1 + $0x578] sm:$0xff]  ;;  %v1061_v8 = vld [vmem:[%s1922_s1 + $0x470] sm:$0xff] }
  0x4a   : > { %519 = vmatpush.msrb.mxu0 %v230_v10  ;;  %548 = vmatpush.msrb.mxu1 %v262_v11  ;;  %v1093_v9 = vld [vmem:[%s1922_s1 + $0x570] sm:$0xff]  ;;  %v1060_v10 = vld [vmem:[%s1922_s1 + $0x468] sm:$0xff] }
  0x4b   : > { %417 = vmatmul.f32.gmra.mxu0 %v381_v12  ;;  %446 = vmatmul.f32.gmra.mxu1 %v383_v13  ;;  %v1092_v11 = vld [vmem:[%s1922_s1 + $0x568] sm:$0xff] }
  0x4c   : > { %475 = vmatmul.f32.gmra.mxu2 %v381_v12  ;;  %504 = vmatmul.f32.gmra.mxu3 %v383_v13  ;;  %v1059_v12 = vld [vmem:[%s1922_s1 + $0x460] sm:$0xff] }
  0x4d   : > { %578 = vmatpush.msrb.mxu2 %v229_v16  ;;  %607 = vmatpush.msrb.mxu3 %v261_v17  ;;  %v1091_v13 = vld [vmem:[%s1922_s1 + $0x560] sm:$0xff]  ;;  %v1058_v16 = vld [vmem:[%s1922_s1 + $0x458] sm:$0xff] }
  0x4e   : > { %520 = vmatpush.msrb.mxu0 %v228_v18  ;;  %549 = vmatpush.msrb.mxu1 %v260_v19  ;;  %v1090_v17 = vld [vmem:[%s1922_s1 + $0x558] sm:$0xff]  ;;  %v1057_v18 = vld [vmem:[%s1922_s1 + $0x450] sm:$0xff] }
  0x4f   : > { %579 = vmatpush.msrb.mxu2 %v227_v20  ;;  %608 = vmatpush.msrb.mxu3 %v259_v21  ;;  %v1089_v19 = vld [vmem:[%s1922_s1 + $0x550] sm:$0xff]  ;;  %v1056_v20 = vld [vmem:[%s1922_s1 + $0x448] sm:$0xff] }
  0x50   : > { %521 = vmatpush.msrb.mxu0 %v226_v22  ;;  %550 = vmatpush.msrb.mxu1 %v258_v23  ;;  %v1088_v21 = vld [vmem:[%s1922_s1 + $0x548] sm:$0xff]  ;;  %v1055_v22 = vld [vmem:[%s1922_s1 + $0x440] sm:$0xff] }
  0x51   : > { %580 = vmatpush.msrb.mxu2 %v225_v24  ;;  %609 = vmatpush.msrb.mxu3 %v257_v25  ;;  %v1087_v23 = vld [vmem:[%s1922_s1 + $0x540] sm:$0xff]  ;;  %v1054_v24 = vld [vmem:[%s1922_s1 + $0x438] sm:$0xff] }
  0x52   : > { %522 = vmatpush.msrb.mxu0 %v224_v26  ;;  %551 = vmatpush.msrb.mxu1 %v256_v27  ;;  %v1086_v25 = vld [vmem:[%s1922_s1 + $0x538] sm:$0xff]  ;;  %v1053_v26 = vld [vmem:[%s1922_s1 + $0x430] sm:$0xff] }
  0x53   : > { %581 = vmatpush.msrb.mxu2 %v223_v28  ;;  %610 = vmatpush.msrb.mxu3 %v255_v29  ;;  %v1085_v27 = vld [vmem:[%s1922_s1 + $0x530] sm:$0xff]  ;;  %v624_v28 = vld [vmem:[%s1345_s11] sm:$0xfc]  ;;  %v625_v29 = vld [vmem:[%s1345_s11 + $0x8] sm:$0xfc] }
  0x54   : > { %523 = vmatpush.msrb.mxu0 %v222_v30  ;;  %552 = vmatpush.msrb.mxu1 %v254_v31  ;;  %v1052_v30 = vld [vmem:[%s1922_s1 + $0x428] sm:$0xff] }
  0x55   : > { %524 = vmatmul.f32.vlgmr.msrb.gmra.mxu0 %v214_v32  ;;  %553 = vmatmul.f32.vlgmr.msrb.gmra.mxu1 %v215_v33  ;;  %v1084_v31 = vld [vmem:[%s1922_s1 + $0x528] sm:$0xff] }
  0x56   : > { %582 = vmatmul.f32.vlgmr.msrb.gmra.mxu2 %v214_v32  ;;  %611 = vmatmul.f32.vlgmr.msrb.gmra.mxu3 %v215_v33  ;;  %v1051_v32 = vld [vmem:[%s1922_s1 + $0x420] sm:$0xff] }
  0x57   : > { %782 = vmatpush.msra.mxu2 %v1078_v34  ;;  %811 = vmatpush.msra.mxu3 %v1110_v35  ;;  %v1083_v33 = vld [vmem:[%s1922_s1 + $0x520] sm:$0xff]  ;;  %v1050_v34 = vld [vmem:[%s1922_s1 + $0x418] sm:$0xff] }
  0x58   : > { %724 = vmatpush.msra.mxu0 %v1077_v38  ;;  %753 = vmatpush.msra.mxu1 %v1109_v39  ;;  %v1082_v35 = vld [vmem:[%s1922_s1 + $0x518] sm:$0xff]  ;;  %v698_v38 = vrot.slane %v624_v28, 2  ;;  %v699_v39 = vrot.slane %v1372_v52, 2 }
  0x59   : > { %783 = vmatpush.msra.mxu2 %v1076_v40  ;;  %812 = vmatpush.msra.mxu3 %v1108_v41  ;;  %v701_v40 = vrot.slane %v625_v29, 2  ;;  %v702_v41 = vrot.slane %v1376_v54, 2 }
  0x5a   : > { %725 = vmatpush.msra.mxu0 %v1075_v42  ;;  %754 = vmatpush.msra.mxu1 %v1107_v43  ;;  %v1049_v42 = vld [vmem:[%s1922_s1 + $0x410] sm:$0xff] }
  0x5b   : > { %784 = vmatpush.msra.mxu2 %v1074_v44  ;;  %813 = vmatpush.msra.mxu3 %v1106_v45  ;;  %v1081_v43 = vld [vmem:[%s1922_s1 + $0x510] sm:$0xff]  ;;  %v1047_v44 = vld [vmem:[%s1922_s1 + $0x400] sm:$0xff] }
  0x5c   : > { %726 = vmatpush.msra.mxu0 %v1073_v46  ;;  %755 = vmatpush.msra.mxu1 %v1105_v47  ;;  %v1079_v45 = vld [vmem:[%s1922_s1 + $0x500] sm:$0xff]  ;;  %v700_v46 = vsel %vm697_vm1, %v698_v38, %v699_v39  ;;  %v703_v47 = vsel %vm697_vm1, %v701_v40, %v702_v41 }
  0x5d   : > { %785 = vmatpush.msra.mxu2 %v1072_v48  ;;  %814 = vmatpush.msra.mxu3 %v1104_v49  ;;  %v704_v48 = vrot.slane %v1432_v14, 2  ;;  %v706_v49 = vrot.slane %v1435_v15, 2 }
  0x5e   : > { %727 = vmatpush.msra.mxu0 %v1071_v50  ;;  %756 = vmatpush.msra.mxu1 %v1103_v51 }
  0x5f   : > { %527 = vmatmul.f32.gmra.mxu0 %v1372_v52  ;;  %556 = vmatmul.f32.gmra.mxu1 %v1376_v54  ;;  %v705_v50 = vsel %vm697_vm1, %v699_v39, %v704_v48  ;;  %v707_v51 = vsel %vm697_vm1, %v702_v41, %v706_v49 }
  0x60   : > { %585 = vmatmul.f32.gmra.mxu2 %v1372_v52  ;;  %614 = vmatmul.f32.gmra.mxu3 %v1376_v54  ;;  %v1048_v52 = vld [vmem:[%s1922_s1 + $0x408] sm:$0xff] }
  0x61   : > { %786 = vmatpush.msra.mxu2 %v1070_v53  ;;  %815 = vmatpush.msra.mxu3 %v1102_v55  ;;  %v1080_v54 = vld [vmem:[%s1922_s1 + $0x508] sm:$0xff]  ;;  %v708_v53 = vrot.slane %v1490_v36, 2  ;;  %v710_v55 = vrot.slane %v1493_v37, 2 }
  0x62   : > { %728 = vmatpush.msra.mxu0 %v1069_v56  ;;  %757 = vmatpush.msra.mxu1 %v1101_v57 }
  0x63   : > { %787 = vmatpush.msra.mxu2 %v1068_v58  ;;  %816 = vmatpush.msra.mxu3 %v1100_v59  ;;  %v709_v56 = vsel %vm697_vm1, %v704_v48, %v708_v53  ;;  %v711_v57 = vsel %vm697_vm1, %v706_v49, %v710_v55  ;;  %v626_v58 = vld [vmem:[%s1345_s11 + $0x40] sm:$0x3] }
  0x64   : > { %729 = vmatpush.msra.mxu0 %v1067_v60  ;;  %758 = vmatpush.msra.mxu1 %v1099_v61 }
  0x65   : > { %788 = vmatpush.msra.mxu2 %v1066_v62  ;;  %817 = vmatpush.msra.mxu3 %v1098_v63 }
  0x66   : > { %730 = vmatpush.msra.mxu0 %v1065_v0  ;;  %759 = vmatpush.msra.mxu1 %v1097_v1 }
  0x67   : > { %789 = vmatpush.msra.mxu2 %v1064_v2  ;;  %818 = vmatpush.msra.mxu3 %v1096_v3 }
  0x68   : > { %731 = vmatpush.msra.mxu0 %v1063_v4  ;;  %760 = vmatpush.msra.mxu1 %v1095_v5 }
  0x69   : > { %530 = vmatmul.f32.gmra.mxu0 %v1432_v14  ;;  %559 = vmatmul.f32.gmra.mxu1 %v1435_v15 }
  0x6a   : > { %588 = vmatmul.f32.gmra.mxu2 %v1432_v14  ;;  %617 = vmatmul.f32.gmra.mxu3 %v1435_v15  ;;  %v627_v14 = vld [vmem:[%s1345_s11 + $0x48] sm:$0x3]  ;;  %v712_v15 = vrot.slane %v626_v58, 2 }
  0x6b   : > { %790 = vmatpush.msra.mxu2 %v1062_v6  ;;  %819 = vmatpush.msra.mxu3 %v1094_v7  ;;  %v714_v59 = vrot.slane %v627_v14, 2 }
  0x6c   : > { %732 = vmatpush.msra.mxu0 %v1061_v8  ;;  %761 = vmatpush.msra.mxu1 %v1093_v9  ;;  %v713_v60 = vsel %vm697_vm1, %v708_v53, %v712_v15 }
  0x6d   : > { %791 = vmatpush.msra.mxu2 %v1060_v10  ;;  %820 = vmatpush.msra.mxu3 %v1092_v11  ;;  %v715_v61 = vsel %vm697_vm1, %v710_v55, %v714_v59 }
  0x6e   : > { %733 = vmatpush.msra.mxu0 %v1059_v12  ;;  %762 = vmatpush.msra.mxu1 %v1091_v13 }
  0x6f   : > { %792 = vmatpush.msra.mxu2 %v1058_v16  ;;  %821 = vmatpush.msra.mxu3 %v1090_v17 }
  0x70   : > { %734 = vmatpush.msra.mxu0 %v1057_v18  ;;  %763 = vmatpush.msra.mxu1 %v1089_v19 }
  0x71   : > { %793 = vmatpush.msra.mxu2 %v1056_v20  ;;  %822 = vmatpush.msra.mxu3 %v1088_v21 }
  0x72   : > { %735 = vmatpush.msra.mxu0 %v1055_v22  ;;  %764 = vmatpush.msra.mxu1 %v1087_v23 }
  0x73   : > { %533 = vmatmul.f32.gmra.mxu0 %v1490_v36  ;;  %562 = vmatmul.f32.gmra.mxu1 %v1493_v37 }
  0x74   : > { %591 = vmatmul.f32.gmra.mxu2 %v1490_v36  ;;  %620 = vmatmul.f32.gmra.mxu3 %v1493_v37 }
  0x75   : > { %794 = vmatpush.msra.mxu2 %v1054_v24  ;;  %823 = vmatpush.msra.mxu3 %v1086_v25 }
  0x76   : > { %736 = vmatpush.msra.mxu0 %v1053_v26  ;;  %765 = vmatpush.msra.mxu1 %v1085_v27 }
  0x77   : > { %795 = vmatpush.msra.mxu2 %v1052_v30  ;;  %824 = vmatpush.msra.mxu3 %v1084_v31 }
  0x78   : > { %737 = vmatpush.msra.mxu0 %v1051_v32  ;;  %766 = vmatpush.msra.mxu1 %v1083_v33  ;;  %v848_v32 = vld [vmem:[%s1923_s2] sm:$0x3] }
  0x79   : > { %796 = vmatpush.msra.mxu2 %v1050_v34  ;;  %825 = vmatpush.msra.mxu3 %v1082_v35  ;;  %v1882_v39 = vperm.slane %v848_v32, 0  ;;  %v851_v49 = vperm.slane %v848_v32, 1 }
  0x7a   : > { %738 = vmatpush.msra.mxu0 %v1049_v42  ;;  %767 = vmatpush.msra.mxu1 %v1081_v43 }
  0x7b   : > { %797 = vmatpush.msra.mxu2 %v1048_v52  ;;  %826 = vmatpush.msra.mxu3 %v1080_v54 }
  0x7c   : > { %739 = vmatpush.msra.mxu0 %v1047_v44  ;;  %768 = vmatpush.msra.mxu1 %v1079_v45 }
  0x7d   : > { %740 = vmatmul.f32.vlgmr.msra.gmra.mxu0 %v700_v46  ;;  %769 = vmatmul.f32.vlgmr.msra.gmra.mxu1 %v703_v47 }
  0x7e   : > { %798 = vmatmul.f32.vlgmr.msra.gmra.mxu2 %v700_v46  ;;  %827 = vmatmul.f32.vlgmr.msra.gmra.mxu3 %v703_v47 }
  0x85   : > { %743 = vmatmul.f32.gmra.mxu0 %v705_v50  ;;  %772 = vmatmul.f32.gmra.mxu1 %v707_v51 }
  0x86   : > { %801 = vmatmul.f32.gmra.mxu2 %v705_v50  ;;  %830 = vmatmul.f32.gmra.mxu3 %v707_v51 }
  0x8d   : > { %746 = vmatmul.f32.gmra.mxu0 %v709_v56  ;;  %775 = vmatmul.f32.gmra.mxu1 %v711_v57 }
  0x8e   : > { %804 = vmatmul.f32.gmra.mxu2 %v709_v56  ;;  %833 = vmatmul.f32.gmra.mxu3 %v711_v57 }
  0x95   : > { %749 = vmatmul.f32.gmra.mxu0 %v713_v60  ;;  %778 = vmatmul.f32.gmra.mxu1 %v715_v61 }
  0x96   : > { %807 = vmatmul.f32.gmra.mxu2 %v713_v60  ;;  %836 = vmatmul.f32.gmra.mxu3 %v715_v61 }
  0xaa   : > { %v409_v36 = vpop.f32.mrf.mxu0  ;;  %v438_v37 = vpop.f32.mrf.mxu1 }
  0xab   : > { %v439_v28 = vadd.f32 %v438_v37, %v409_v36 }
  0xb1   : > { %v467_v62 = vpop.f32.mrf.mxu2  ;;  %v496_v63 = vpop.f32.mrf.mxu3 }
  0xb2   : > { %v497_v40 = vadd.f32 %v496_v63, %v467_v62 }
  0xb4   : > { %v412_v0 = vpop.f32.mrf.mxu0  ;;  %v441_v1 = vpop.f32.mrf.mxu1 }
  0xb5   : > { %v442_v41 = vadd.f32 %v441_v1, %v412_v0 }
  0xbb   : > { %v470_v2 = vpop.f32.mrf.mxu2  ;;  %v499_v3 = vpop.f32.mrf.mxu3 }
  0xbc   : > { %v500_v56 = vadd.f32 %v499_v3, %v470_v2 }
  0xbe   : > { %v415_v4 = vpop.f32.mrf.mxu0  ;;  %v444_v5 = vpop.f32.mrf.mxu1 }
  0xbf   : > { %v445_v58 = vadd.f32 %v444_v5, %v415_v4 }
  0xc5   : > { %v1859_v6 = vpop.f32.mrf.mxu2  ;;  %v1861_v7 = vpop.f32.mrf.mxu3 }
  0xc6   : > { %v503_v3 = vadd.f32 %v1861_v7, %v1859_v6 }
  0xc8   : > { %v1863_v8 = vpop.f32.mrf.mxu0  ;;  %v1865_v9 = vpop.f32.mrf.mxu1 }
  0xc9   : > { %v448_v5 = vadd.f32 %v1865_v9, %v1863_v8 }
  0xcf   : > { %v1867_v10 = vpop.f32.mrf.mxu2  ;;  %v1869_v11 = vpop.f32.mrf.mxu3 }
  0xd2   : > { %v525_v12 = vpop.f32.mrf.mxu0  ;;  %v554_v13 = vpop.f32.mrf.mxu1 }
  0xd3   : > { %v526_v29 = vadd.f32 %v525_v12, %v439_v28 }
  0xd5   : > { %v555_v35 = vadd.f32 %v554_v13, %v526_v29 }
  0xd9   : > { %v583_v16 = vpop.f32.mrf.mxu2  ;;  %v612_v17 = vpop.f32.mrf.mxu3 }
  0xda   : > { %v584_v43 = vadd.f32 %v583_v16, %v497_v40 }
  0xdc   : > { %v528_v18 = vpop.f32.mrf.mxu0  ;;  %v557_v19 = vpop.f32.mrf.mxu1  ;;  %v613_v47 = vadd.f32 %v612_v17, %v584_v43 }
  0xdd   : > { %v529_v52 = vadd.f32 %v528_v18, %v442_v41 }
  0xdf   : > { %v558_v53 = vadd.f32 %v557_v19, %v529_v52 }
  0xe3   : > { %v586_v20 = vpop.f32.mrf.mxu2  ;;  %v615_v21 = vpop.f32.mrf.mxu3 }
  0xe4   : > { %v587_v15 = vadd.f32 %v586_v20, %v500_v56 }
  0xe6   : > { %v531_v22 = vpop.f32.mrf.mxu0  ;;  %v560_v23 = vpop.f32.mrf.mxu1  ;;  %v616_v0 = vadd.f32 %v615_v21, %v587_v15 }
  0xe7   : > { %v532_v60 = vadd.f32 %v531_v22, %v445_v58 }
  0xe9   : > { %v561_v16 = vadd.f32 %v560_v23, %v532_v60 }
  0xed   : > { %v589_v24 = vpop.f32.mrf.mxu2  ;;  %v1871_v25 = vpop.f32.mrf.mxu3 }
  0xee   : > { %v590_v18 = vadd.f32 %v589_v24, %v503_v3  ;;  %v506_v24 = vadd.f32 %v1869_v11, %v1867_v10 }
  0xf0   : > { %v534_v26 = vpop.f32.mrf.mxu0  ;;  %v1873_v27 = vpop.f32.mrf.mxu1  ;;  %v619_v32 = vadd.f32 %v1871_v25, %v590_v18 }
  0xf1   : > { %v535_v20 = vadd.f32 %v534_v26, %v448_v5 }
  0xf3   : > { %v564_v8 = vadd.f32 %v1873_v27, %v535_v20 }
  0xf7   : > { %v1875_v30 = vpop.f32.mrf.mxu2  ;;  %v1877_v31 = vpop.f32.mrf.mxu3 }
  0xfa   : > { %v741_v33 = vpop.f32.mrf.mxu0  ;;  %v770_v34 = vpop.f32.mrf.mxu1 }
  0xfb   : > { %v771_v38 = vadd.f32 %v770_v34, %v741_v33 }
  0xfd   : > { %v840_v42 = vadd.f32 %v771_v38, %v555_v35  ;;  %v593_v35 = vadd.f32 %v1875_v30, %v506_v24 }
  0xff   : > { %v854_v54 = vadd.f32 %v1882_v39, %v840_v42  ;;  %v622_v27 = vadd.f32 %v1877_v31, %v593_v35 }
 0x101   : > { %v862_v44 = vmax.f32 %v854_v54, 0.0  ;;  %v799_v45 = vpop.f32.mrf.mxu2  ;;  %v828_v46 = vpop.f32.mrf.mxu3 }
 0x102   : > { %v829_v48 = vadd.f32 %v828_v46, %v799_v45  ;;  %v744_v50 = vpop.f32.mrf.mxu0  ;;  %v773_v51 = vpop.f32.mrf.mxu1 }
 0x103   : > { %870 = vst [vmem:[%s1889_s30] sm:$0xff] %v862_v44  ;;  %v774_v55 = vadd.f32 %v773_v51, %v744_v50 }
 0x104   : > { %v841_v57 = vadd.f32 %v829_v48, %v613_v47 }
 0x105   : > { %v842_v14 = vadd.f32 %v774_v55, %v558_v53 }
 0x106   : > { %v855_v59 = vadd.f32 %v851_v49, %v841_v57 }
 0x107   : > { %v856_v61 = vadd.f32 %v1882_v39, %v842_v14 }
 0x108   : > { %v863_v36 = vmax.f32 %v855_v59, 0.0 }
 0x109   : > { %v864_v37 = vmax.f32 %v856_v61, 0.0  ;;  %v802_v62 = vpop.f32.mrf.mxu2  ;;  %v831_v63 = vpop.f32.mrf.mxu3 }
 0x10a   : > { %871 = vst [vmem:[%s1889_s30 + $0x8] sm:$0xff] %v863_v36  ;;  %v832_v1 = vadd.f32 %v831_v63, %v802_v62  ;;  %v747_v12 = vpop.f32.mrf.mxu0  ;;  %v776_v13 = vpop.f32.mrf.mxu1 }
 0x10b   : > { %872 = vst [vmem:[%s1889_s30 + $0x10] sm:$0xff] %v864_v37  ;;  %v777_v2 = vadd.f32 %v776_v13, %v747_v12 }
 0x10c   : > { %v843_v4 = vadd.f32 %v832_v1, %v616_v0 }
 0x10d   : > { %v844_v17 = vadd.f32 %v777_v2, %v561_v16 }
 0x10e   : > { %v857_v19 = vadd.f32 %v851_v49, %v843_v4 }
 0x10f   : > { %v858_v21 = vadd.f32 %v1882_v39, %v844_v17 }
 0x110   : > { %v865_v22 = vmax.f32 %v857_v19, 0.0 }
 0x111   : > { %v866_v28 = vmax.f32 %v858_v21, 0.0  ;;  %v805_v23 = vpop.f32.mrf.mxu2  ;;  %v834_v29 = vpop.f32.mrf.mxu3 }
 0x112   : > { %873 = vst [vmem:[%s1889_s30 + $0x18] sm:$0xff] %v865_v22  ;;  %v835_v33 = vadd.f32 %v834_v29, %v805_v23  ;;  %v750_v6 = vpop.f32.mrf.mxu0  ;;  %v779_v7 = vpop.f32.mrf.mxu1 }
 0x113   : > { %874 = vst [vmem:[%s1889_s30 + $0x20] sm:$0xff] %v866_v28  ;;  %v780_v9 = vadd.f32 %v779_v7, %v750_v6 }
 0x114   : > { %v845_v26 = vadd.f32 %v835_v33, %v619_v32 }
 0x115   : > { %v846_v34 = vadd.f32 %v780_v9, %v564_v8 }
 0x116   : > { %v859_v38 = vadd.f32 %v851_v49, %v845_v26 }
 0x117   : > { %v860_v25 = vadd.f32 %v1882_v39, %v846_v34 }
 0x118   : > { %v867_v40 = vmax.f32 %v859_v38, 0.0 }
 0x119   : > { %v868_v41 = vmax.f32 %v860_v25, 0.0  ;;  %v808_v42 = vpop.f32.mrf.mxu2  ;;  %v837_v43 = vpop.f32.mrf.mxu3 }
 0x11a   : > { %875 = vst [vmem:[%s1889_s30 + $0x28] sm:$0xff] %v867_v40  ;;  %v838_v52 = vadd.f32 %v837_v43, %v808_v42 }
 0x11b   : > { %876 = vst [vmem:[%s1889_s30 + $0x30] sm:$0xff] %v868_v41 }
 0x11c   : > { %v847_v54 = vadd.f32 %v838_v52, %v622_v27 }
 0x11e   : > { %v861_v44 = vadd.f32 %v851_v49, %v847_v54 }
 0x120   : > { %v869_v10 = vmax.f32 %v861_v44, 0.0 }
 0x122   : > { %877 = vst [vmem:[%s1889_s30 + $0x38] sm:$0xff] %v869_v10 }
 0x123 PF: > { %s13_s14 = sadd.s32 1, %s1161_s14   ;;  %s1925_s12 = smov %s1157_s13 }
 0x124   : > { %p10_p5 = scmp.ge.s32.totalorder %s13_s14, 4   ;;  %s1926_s13 = smov %s1928_s15 }
 0x126   :  { %12 = sbr.rel (!%p10_p5) target bundleno = 2 (0x2), region = 67 }

</bundles_post_ra>
